<compile_context>
chip_gen: v7x
topology: tpu7x:2x2x1
jax: 0.10.0
libtpu: 0.0.40
codegen_flags: <defaults>
</compile_context>

<pallas_src>
import functools

import jax
import jax.numpy as jnp
from jax import lax
from jax.experimental import pallas as pl
from jax.experimental.pallas import tpu as pltpu


_STATIC_UNROLL_MAX_T = 32   # fully unroll the recurrence for short sequences
_FCP = 128                  # lane-dense padded width of the fc0/fc1 head
_NEG_BIG = -1e30            # pad bias for unused fc1 columns (kills them in log_softmax)


def _sigmoid(x):
    # One EUP push per vreg (tanh) instead of exp + reciprocal.
    return 0.5 * (jnp.tanh(0.5 * x) + 1.0)


def _bilstm_head_kernel(gx_ref, wh_ref, fc0_w_ref, fc0_b_ref, fc1_w_ref, fc1_b_ref,
                        out_ref, *, T, Bp, SLOT):
    """gx_ref : (T, Bp, 4*SLOT) per-step gate inputs (emb@Wih + bias), slot layout
                 [i | f | o | g], each slot = [fwd(0:H) | bwd(H:2H) | 0-pad]; the
                 backward half of gx[t] already corresponds to token T-1-t.
    wh_ref   : (SLOT, 4*SLOT) fused fwd+bwd recurrence weights in the same layout.
    fc0_w_ref: (SLOT, FCP), fc0_b_ref: (1, FCP)   (zero-padded past col 100).
    fc1_w_ref: (FCP, FCP),  fc1_b_ref: (1, FCP)   (pad cols carry -1e30 bias).
    out_ref  : (Bp, FCP) lane-dense log-softmax slab; cols 0:2 are the answer."""
    wh = wh_ref[...]

    def step(t, h, c):
        # Single fused fwd+bwd recurrence matmul; h pad lanes stay exactly zero.
        gates = gx_ref[t] + jnp.dot(h, wh, preferred_element_type=jnp.float32)
        s = _sigmoid(gates[:, :3 * SLOT])          # [i | f | o], lane-aligned slots
        g = jnp.tanh(gates[:, 3 * SLOT:])          # [g]
        c = s[:, SLOT:2 * SLOT] * c + s[:, :SLOT] * g
        h = s[:, 2 * SLOT:3 * SLOT] * jnp.tanh(c)
        return h, c

    h = jnp.zeros((Bp, SLOT), jnp.float32)
    c = jnp.zeros((Bp, SLOT), jnp.float32)
    if T <= _STATIC_UNROLL_MAX_T:
        for t in range(T):                         # static unroll: scheduler sees all steps
            h, c = step(t, h, c)
    else:                                          # bound live ranges for long sequences
        h, c = lax.fori_loop(0, T, lambda t, hc: step(t, *hc), (h, c), unroll=2)

    # Head: h = [h_fwd | h_bwd | 0] multiplies the row-permuted, zero-padded fc0.
    y = jnp.dot(h, fc0_w_ref[...], preferred_element_type=jnp.float32) + fc0_b_ref[...]
    # Dropout(p=0.0) -> identity.
    y = jnp.tanh(y)
    y = jnp.dot(y, fc1_w_ref[...], preferred_element_type=jnp.float32) + fc1_b_ref[...]

    # log_softmax over dim=1; padded columns carry bias -1e30 so they contribute 0.
    m = jnp.max(y, axis=1, keepdims=True)
    z = y - m
    lse = jnp.log(jnp.sum(jnp.exp(z), axis=1, keepdims=True))
    out_ref[...] = z - lse


def init_params(key, vocab_size, emb_dim, hidden_dim):
    H = hidden_dim
    ks = jax.random.split(key, 13)
    emb = jax.random.normal(ks[0], (vocab_size, emb_dim), jnp.float32)
    emb = emb.at[0].set(0.0)  # padding_idx=0
    s = 1.0 / float(H) ** 0.5

    def u(k, shape, scale):
        return jax.random.uniform(k, shape, jnp.float32, -scale, scale)

    params = {
        "emb": emb,
        "wih_f": u(ks[1], (4 * H, emb_dim), s),
        "whh_f": u(ks[2], (4 * H, H), s),
        "bih_f": u(ks[3], (4 * H,), s),
        "bhh_f": u(ks[4], (4 * H,), s),
        "wih_b": u(ks[5], (4 * H, emb_dim), s),
        "whh_b": u(ks[6], (4 * H, H), s),
        "bih_b": u(ks[7], (4 * H,), s),
        "bhh_b": u(ks[8], (4 * H,), s),
    }
    s0 = 1.0 / float(2 * H) ** 0.5
    params["fc0_w"] = u(ks[9], (100, 2 * H), s0)
    params["fc0_b"] = u(ks[10], (100,), s0)
    s1 = 1.0 / float(100) ** 0.5
    params["fc1_w"] = u(ks[11], (2, 100), s1)
    params["fc1_b"] = u(ks[12], (2,), s1)
    return params


def lstm_forward(x_tokens, params):
    B, T = x_tokens.shape
    V, E = params["emb"].shape
    H = params["whh_f"].shape[1]
    SLOT = max(128, ((2 * H + 127) // 128) * 128)   # 128-lane gate slot [fwd|bwd|pad]

    def gate_perm(w):  # reorder PyTorch gate blocks i,f,g,o -> i,f,o,g along axis 0
        return jnp.concatenate([w[0:H], w[H:2 * H], w[3 * H:4 * H], w[2 * H:3 * H]], axis=0)

    # ---- precomputed input-projection tables: table = emb @ Wih^T + (bih + bhh) ----
    tab_f = (params["emb"] @ gate_perm(params["wih_f"]).T
             + gate_perm(params["bih_f"] + params["bhh_f"]))          # (V, 4H)
    tab_b = (params["emb"] @ gate_perm(params["wih_b"]).T
             + gate_perm(params["bih_b"] + params["bhh_b"]))          # (V, 4H)

    def to_slots(mat, off):  # (R, 4H) -> (R, 4*SLOT); gate k into slot k at lane `off`
        blocks = [jnp.pad(mat[:, k * H:(k + 1) * H], ((0, 0), (off, SLOT - off - H)))
                  for k in range(4)]
        return jnp.concatenate(blocks, axis=1)

    tab_f_pad = to_slots(tab_f, 0)   # fwd occupies lanes 0:H of every slot
    tab_b_pad = to_slots(tab_b, H)   # bwd occupies lanes H:2H of every slot

    # ---- per-step gate inputs: forward tokens + time-reversed backward tokens ----
    Bp = max(8, ((B + 7) // 8) * 8)          # pad batch to the f32 sublane granularity
    x_pad = jnp.pad(x_tokens, ((0, Bp - B), (0, 0)))     # pad rows use token 0
    xt = x_pad.T                                          # (T, Bp), time-major
    # TODO(synk): the data-dependent row gather stays in plain XLA; it has no clean
    # rectangular BlockSpec equivalent and is tiny compared to the recurrence.
    gx = tab_f_pad[xt] + tab_b_pad[xt[::-1]]              # (T, Bp, 4*SLOT), f32

    # ---- fused recurrence weights in the same slot layout: (SLOT, 4*SLOT) ----
    def hh_to_slots(whh, off):
        w = to_slots(gate_perm(whh).T, off)               # (H, 4*SLOT)
        return jnp.pad(w, ((off, SLOT - off - H), (0, 0)))
    wh = hh_to_slots(params["whh_f"], 0) + hh_to_slots(params["whh_b"], H)

    # ---- head: torch feat order is [bwd, fwd]; kernel h is [fwd | bwd | 0] ----
    fc0_rows = jnp.concatenate([params["fc0_w"][:, H:2 * H].T,     # fwd weight rows
                                params["fc0_w"][:, 0:H].T], axis=0)  # bwd weight rows
    fc0_w = jnp.pad(fc0_rows, ((0, SLOT - 2 * H), (0, _FCP - 100)))
    fc0_b = jnp.pad(params["fc0_b"], (0, _FCP - 100))[None, :]
    fc1_w = jnp.pad(params["fc1_w"].T, ((0, _FCP - 100), (0, _FCP - 2)))
    fc1_b = jnp.concatenate(
        [params["fc1_b"], jnp.full((_FCP - 2,), _NEG_BIG, jnp.float32)])[None, :]

    args = (gx.astype(jnp.float32), wh.astype(jnp.float32),
            fc0_w.astype(jnp.float32), fc0_b.astype(jnp.float32),
            fc1_w.astype(jnp.float32), fc1_b.astype(jnp.float32))

    # Size the scoped-VMEM request from the real footprint (portable to v7x 64 MiB).
    in_bytes = sum(int(a.size) * a.dtype.itemsize for a in args)
    out_bytes = Bp * _FCP * 4
    vmem_limit = int(min(64 << 20, max(8 << 20, 2 * (in_bytes + out_bytes) + (2 << 20))))

    vmem = pl.BlockSpec(memory_space=pltpu.MemorySpace.VMEM)
    kernel = functools.partial(_bilstm_head_kernel, T=T, Bp=Bp, SLOT=SLOT)
    out = pl.pallas_call(
        kernel,
        out_shape=jax.ShapeDtypeStruct((Bp, _FCP), jnp.float32),
        in_specs=[vmem] * len(args),
        out_specs=vmem,
        compiler_params=pltpu.CompilerParams(vmem_limit_bytes=vmem_limit),
    )(*args)
    return out[:B, :2]


def ref_forward(x_tokens, params):
    """Pure-JAX reference matching PyTorch LSTM/Linear/log_softmax semantics."""
    H = params["whh_f"].shape[1]
    x_emb = params["emb"][x_tokens]                 # (B, T, E)
    xs = jnp.transpose(x_emb, (1, 0, 2))            # (T, B, E)

    def run(seq, wih, whh, b):
        def step(carry, x_t):
            h, c = carry
            gates = x_t @ wih.T + h @ whh.T + b
            i = jax.nn.sigmoid(gates[:, :H])
            f = jax.nn.sigmoid(gates[:, H:2 * H])
            g = jnp.tanh(gates[:, 2 * H:3 * H])
            o = jax.nn.sigmoid(gates[:, 3 * H:])
            c = f * c + i * g
            h = o * jnp.tanh(c)
            return (h, c), None

        B = seq.shape[1]
        h0 = jnp.zeros((B, H), jnp.float32)
        c0 = jnp.zeros((B, H), jnp.float32)
        (h, _), _ = lax.scan(step, (h0, c0), seq)
        return h

    h_f = run(xs, params["wih_f"], params["whh_f"], params["bih_f"] + params["bhh_f"])
    h_b = run(xs[::-1], params["wih_b"], params["whh_b"], params["bih_b"] + params["bhh_b"])
    feat = jnp.concatenate([h_b, h_f], axis=1)
    y = feat @ params["fc0_w"].T + params["fc0_b"]
    y = jnp.tanh(y) @ params["fc1_w"].T + params["fc1_b"]
    return jax.nn.log_softmax(y, axis=1)


if __name__ == "__main__":
    B, T, V, E, H = 2, 8, 50, 16, 32
    key = jax.random.PRNGKey(0)
    kx, kp = jax.random.split(key)
    x = jax.random.randint(kx, (B, T), 0, V, dtype=jnp.int32)
    x = x.at[0, -2:].set(0)  # exercise padding_idx=0 rows
    params = init_params(kp, V, E, H)

    out = jax.jit(lstm_forward)(x, params)
    out = jax.block_until_ready(out)

    ref = ref_forward(x, params)
    assert out.shape == (B, 2)
    assert jnp.allclose(out, ref, atol=1e-3, rtol=1e-3), (out, ref)
    print("KERNEL_OK")
</pallas_src>

<mosaic_0001>
module attributes {stable_mosaic.version = 11 : i64} {
  func.func @_bilstm_head_kernel(%arg0: memref<8x8x512xf32, #tpu.memory_space<vmem>>, %arg1: memref<128x512xf32, #tpu.memory_space<vmem>>, %arg2: memref<128x128xf32, #tpu.memory_space<vmem>>, %arg3: memref<1x128xf32, #tpu.memory_space<vmem>>, %arg4: memref<128x128xf32, #tpu.memory_space<vmem>>, %arg5: memref<1x128xf32, #tpu.memory_space<vmem>>, %arg6: memref<8x128xf32, #tpu.memory_space<vmem>>) attributes {dimension_semantics = [], scalar_prefetch = 0 : i64, scratch_operands = 0 : i64, tpu.core_type = #tpu.core_type<tc>} {
    %c0 = arith.constant 0 : index
    %c0_0 = arith.constant 0 : index
    %0 = vector.load %arg1[%c0, %c0_0] : memref<128x512xf32, #tpu.memory_space<vmem>>, vector<128x512xf32>
    %cst = arith.constant 0.000000e+00 : f32
    %1 = vector.broadcast %cst : f32 to vector<8x128xf32>
    %cst_1 = arith.constant 0.000000e+00 : f32
    %2 = vector.broadcast %cst_1 : f32 to vector<8x128xf32>
    %c0_2 = arith.constant 0 : index
    %c0_3 = arith.constant 0 : index
    %c0_4 = arith.constant 0 : index
    %3 = vector.load %arg0[%c0_2, %c0_3, %c0_4] : memref<8x8x512xf32, #tpu.memory_space<vmem>>, vector<1x8x512xf32>
    %4 = vector.shape_cast %3 : vector<1x8x512xf32> to vector<8x512xf32>
    %cst_5 = arith.constant dense<0.000000e+00> : vector<8x512xf32>
    %5 = tpu.matmul %1, %0, %cst_5 {dimension_numbers = #tpu.dot_dimension_numbers<[1], [0], [0], [1], [0, 0, 1, 1], [], []>} : vector<8x128xf32>, vector<128x512xf32>, vector<8x512xf32> -> vector<8x512xf32>
    %6 = arith.addf %4, %5 : vector<8x512xf32>
    %7 = vector.extract_strided_slice %6 {offsets = [0, 0], sizes = [8, 384], strides = [1, 1]} : vector<8x512xf32> to vector<8x384xf32>
    %cst_6 = arith.constant 5.000000e-01 : f32
    %8 = vector.broadcast %cst_6 : f32 to vector<8x384xf32>
    %9 = arith.mulf %8, %7 : vector<8x384xf32>
    %10 = math.tanh %9 : vector<8x384xf32>
    %cst_7 = arith.constant 1.000000e+00 : f32
    %11 = vector.broadcast %cst_7 : f32 to vector<8x384xf32>
    %12 = arith.addf %10, %11 : vector<8x384xf32>
    %cst_8 = arith.constant 5.000000e-01 : f32
    %13 = vector.broadcast %cst_8 : f32 to vector<8x384xf32>
    %14 = arith.mulf %13, %12 : vector<8x384xf32>
    %15 = vector.extract_strided_slice %6 {offsets = [0, 384], sizes = [8, 128], strides = [1, 1]} : vector<8x512xf32> to vector<8x128xf32>
    %16 = math.tanh %15 : vector<8x128xf32>
    %17 = vector.extract_strided_slice %14 {offsets = [0, 128], sizes = [8, 128], strides = [1, 1]} : vector<8x384xf32> to vector<8x128xf32>
    %18 = arith.mulf %17, %2 : vector<8x128xf32>
    %19 = vector.extract_strided_slice %14 {offsets = [0, 0], sizes = [8, 128], strides = [1, 1]} : vector<8x384xf32> to vector<8x128xf32>
    %20 = arith.mulf %19, %16 : vector<8x128xf32>
    %21 = arith.addf %18, %20 : vector<8x128xf32>
    %22 = vector.extract_strided_slice %14 {offsets = [0, 256], sizes = [8, 128], strides = [1, 1]} : vector<8x384xf32> to vector<8x128xf32>
    %23 = math.tanh %21 : vector<8x128xf32>
    %24 = arith.mulf %22, %23 : vector<8x128xf32>
    %c1 = arith.constant 1 : index
    %c0_9 = arith.constant 0 : index
    %c0_10 = arith.constant 0 : index
    %25 = vector.load %arg0[%c1, %c0_9, %c0_10] : memref<8x8x512xf32, #tpu.memory_space<vmem>>, vector<1x8x512xf32>
    %26 = vector.shape_cast %25 : vector<1x8x512xf32> to vector<8x512xf32>
    %cst_11 = arith.constant dense<0.000000e+00> : vector<8x512xf32>
    %27 = tpu.matmul %24, %0, %cst_11 {dimension_numbers = #tpu.dot_dimension_numbers<[1], [0], [0], [1], [0, 0, 1, 1], [], []>} : vector<8x128xf32>, vector<128x512xf32>, vector<8x512xf32> -> vector<8x512xf32>
    %28 = arith.addf %26, %27 : vector<8x512xf32>
    %29 = vector.extract_strided_slice %28 {offsets = [0, 0], sizes = [8, 384], strides = [1, 1]} : vector<8x512xf32> to vector<8x384xf32>
    %cst_12 = arith.constant 5.000000e-01 : f32
    %30 = vector.broadcast %cst_12 : f32 to vector<8x384xf32>
    %31 = arith.mulf %30, %29 : vector<8x384xf32>
    %32 = math.tanh %31 : vector<8x384xf32>
    %cst_13 = arith.constant 1.000000e+00 : f32
    %33 = vector.broadcast %cst_13 : f32 to vector<8x384xf32>
    %34 = arith.addf %32, %33 : vector<8x384xf32>
    %cst_14 = arith.constant 5.000000e-01 : f32
    %35 = vector.broadcast %cst_14 : f32 to vector<8x384xf32>
    %36 = arith.mulf %35, %34 : vector<8x384xf32>
    %37 = vector.extract_strided_slice %28 {offsets = [0, 384], sizes = [8, 128], strides = [1, 1]} : vector<8x512xf32> to vector<8x128xf32>
    %38 = math.tanh %37 : vector<8x128xf32>
    %39 = vector.extract_strided_slice %36 {offsets = [0, 128], sizes = [8, 128], strides = [1, 1]} : vector<8x384xf32> to vector<8x128xf32>
    %40 = arith.mulf %39, %21 : vector<8x128xf32>
    %41 = vector.extract_strided_slice %36 {offsets = [0, 0], sizes = [8, 128], strides = [1, 1]} : vector<8x384xf32> to vector<8x128xf32>
    %42 = arith.mulf %41, %38 : vector<8x128xf32>
    %43 = arith.addf %40, %42 : vector<8x128xf32>
    %44 = vector.extract_strided_slice %36 {offsets = [0, 256], sizes = [8, 128], strides = [1, 1]} : vector<8x384xf32> to vector<8x128xf32>
    %45 = math.tanh %43 : vector<8x128xf32>
    %46 = arith.mulf %44, %45 : vector<8x128xf32>
    %c2 = arith.constant 2 : index
    %c0_15 = arith.constant 0 : index
    %c0_16 = arith.constant 0 : index
    %47 = vector.load %arg0[%c2, %c0_15, %c0_16] : memref<8x8x512xf32, #tpu.memory_space<vmem>>, vector<1x8x512xf32>
    %48 = vector.shape_cast %47 : vector<1x8x512xf32> to vector<8x512xf32>
    %cst_17 = arith.constant dense<0.000000e+00> : vector<8x512xf32>
    %49 = tpu.matmul %46, %0, %cst_17 {dimension_numbers = #tpu.dot_dimension_numbers<[1], [0], [0], [1], [0, 0, 1, 1], [], []>} : vector<8x128xf32>, vector<128x512xf32>, vector<8x512xf32> -> vector<8x512xf32>
    %50 = arith.addf %48, %49 : vector<8x512xf32>
    %51 = vector.extract_strided_slice %50 {offsets = [0, 0], sizes = [8, 384], strides = [1, 1]} : vector<8x512xf32> to vector<8x384xf32>
    %cst_18 = arith.constant 5.000000e-01 : f32
    %52 = vector.broadcast %cst_18 : f32 to vector<8x384xf32>
    %53 = arith.mulf %52, %51 : vector<8x384xf32>
    %54 = math.tanh %53 : vector<8x384xf32>
    %cst_19 = arith.constant 1.000000e+00 : f32
    %55 = vector.broadcast %cst_19 : f32 to vector<8x384xf32>
    %56 = arith.addf %54, %55 : vector<8x384xf32>
    %cst_20 = arith.constant 5.000000e-01 : f32
    %57 = vector.broadcast %cst_20 : f32 to vector<8x384xf32>
    %58 = arith.mulf %57, %56 : vector<8x384xf32>
    %59 = vector.extract_strided_slice %50 {offsets = [0, 384], sizes = [8, 128], strides = [1, 1]} : vector<8x512xf32> to vector<8x128xf32>
    %60 = math.tanh %59 : vector<8x128xf32>
    %61 = vector.extract_strided_slice %58 {offsets = [0, 128], sizes = [8, 128], strides = [1, 1]} : vector<8x384xf32> to vector<8x128xf32>
    %62 = arith.mulf %61, %43 : vector<8x128xf32>
    %63 = vector.extract_strided_slice %58 {offsets = [0, 0], sizes = [8, 128], strides = [1, 1]} : vector<8x384xf32> to vector<8x128xf32>
    %64 = arith.mulf %63, %60 : vector<8x128xf32>
    %65 = arith.addf %62, %64 : vector<8x128xf32>
    %66 = vector.extract_strided_slice %58 {offsets = [0, 256], sizes = [8, 128], strides = [1, 1]} : vector<8x384xf32> to vector<8x128xf32>
    %67 = math.tanh %65 : vector<8x128xf32>
    %68 = arith.mulf %66, %67 : vector<8x128xf32>
    %c3 = arith.constant 3 : index
    %c0_21 = arith.constant 0 : index
    %c0_22 = arith.constant 0 : index
    %69 = vector.load %arg0[%c3, %c0_21, %c0_22] : memref<8x8x512xf32, #tpu.memory_space<vmem>>, vector<1x8x512xf32>
    %70 = vector.shape_cast %69 : vector<1x8x512xf32> to vector<8x512xf32>
    %cst_23 = arith.constant dense<0.000000e+00> : vector<8x512xf32>
    %71 = tpu.matmul %68, %0, %cst_23 {dimension_numbers = #tpu.dot_dimension_numbers<[1], [0], [0], [1], [0, 0, 1, 1], [], []>} : vector<8x128xf32>, vector<128x512xf32>, vector<8x512xf32> -> vector<8x512xf32>
    %72 = arith.addf %70, %71 : vector<8x512xf32>
    %73 = vector.extract_strided_slice %72 {offsets = [0, 0], sizes = [8, 384], strides = [1, 1]} : vector<8x512xf32> to vector<8x384xf32>
    %cst_24 = arith.constant 5.000000e-01 : f32
    %74 = vector.broadcast %cst_24 : f32 to vector<8x384xf32>
    %75 = arith.mulf %74, %73 : vector<8x384xf32>
    %76 = math.tanh %75 : vector<8x384xf32>
    %cst_25 = arith.constant 1.000000e+00 : f32
    %77 = vector.broadcast %cst_25 : f32 to vector<8x384xf32>
    %78 = arith.addf %76, %77 : vector<8x384xf32>
    %cst_26 = arith.constant 5.000000e-01 : f32
    %79 = vector.broadcast %cst_26 : f32 to vector<8x384xf32>
    %80 = arith.mulf %79, %78 : vector<8x384xf32>
    %81 = vector.extract_strided_slice %72 {offsets = [0, 384], sizes = [8, 128], strides = [1, 1]} : vector<8x512xf32> to vector<8x128xf32>
    %82 = math.tanh %81 : vector<8x128xf32>
    %83 = vector.extract_strided_slice %80 {offsets = [0, 128], sizes = [8, 128], strides = [1, 1]} : vector<8x384xf32> to vector<8x128xf32>
    %84 = arith.mulf %83, %65 : vector<8x128xf32>
    %85 = vector.extract_strided_slice %80 {offsets = [0, 0], sizes = [8, 128], strides = [1, 1]} : vector<8x384xf32> to vector<8x128xf32>
    %86 = arith.mulf %85, %82 : vector<8x128xf32>
    %87 = arith.addf %84, %86 : vector<8x128xf32>
    %88 = vector.extract_strided_slice %80 {offsets = [0, 256], sizes = [8, 128], strides = [1, 1]} : vector<8x384xf32> to vector<8x128xf32>
    %89 = math.tanh %87 : vector<8x128xf32>
    %90 = arith.mulf %88, %89 : vector<8x128xf32>
    %c4 = arith.constant 4 : index
    %c0_27 = arith.constant 0 : index
    %c0_28 = arith.constant 0 : index
    %91 = vector.load %arg0[%c4, %c0_27, %c0_28] : memref<8x8x512xf32, #tpu.memory_space<vmem>>, vector<1x8x512xf32>
    %92 = vector.shape_cast %91 : vector<1x8x512xf32> to vector<8x512xf32>
    %cst_29 = arith.constant dense<0.000000e+00> : vector<8x512xf32>
    %93 = tpu.matmul %90, %0, %cst_29 {dimension_numbers = #tpu.dot_dimension_numbers<[1], [0], [0], [1], [0, 0, 1, 1], [], []>} : vector<8x128xf32>, vector<128x512xf32>, vector<8x512xf32> -> vector<8x512xf32>
    %94 = arith.addf %92, %93 : vector<8x512xf32>
    %95 = vector.extract_strided_slice %94 {offsets = [0, 0], sizes = [8, 384], strides = [1, 1]} : vector<8x512xf32> to vector<8x384xf32>
    %cst_30 = arith.constant 5.000000e-01 : f32
    %96 = vector.broadcast %cst_30 : f32 to vector<8x384xf32>
    %97 = arith.mulf %96, %95 : vector<8x384xf32>
    %98 = math.tanh %97 : vector<8x384xf32>
    %cst_31 = arith.constant 1.000000e+00 : f32
    %99 = vector.broadcast %cst_31 : f32 to vector<8x384xf32>
    %100 = arith.addf %98, %99 : vector<8x384xf32>
    %cst_32 = arith.constant 5.000000e-01 : f32
    %101 = vector.broadcast %cst_32 : f32 to vector<8x384xf32>
    %102 = arith.mulf %101, %100 : vector<8x384xf32>
    %103 = vector.extract_strided_slice %94 {offsets = [0, 384], sizes = [8, 128], strides = [1, 1]} : vector<8x512xf32> to vector<8x128xf32>
    %104 = math.tanh %103 : vector<8x128xf32>
    %105 = vector.extract_strided_slice %102 {offsets = [0, 128], sizes = [8, 128], strides = [1, 1]} : vector<8x384xf32> to vector<8x128xf32>
    %106 = arith.mulf %105, %87 : vector<8x128xf32>
    %107 = vector.extract_strided_slice %102 {offsets = [0, 0], sizes = [8, 128], strides = [1, 1]} : vector<8x384xf32> to vector<8x128xf32>
    %108 = arith.mulf %107, %104 : vector<8x128xf32>
    %109 = arith.addf %106, %108 : vector<8x128xf32>
    %110 = vector.extract_strided_slice %102 {offsets = [0, 256], sizes = [8, 128], strides = [1, 1]} : vector<8x384xf32> to vector<8x128xf32>
    %111 = math.tanh %109 : vector<8x128xf32>
    %112 = arith.mulf %110, %111 : vector<8x128xf32>
    %c5 = arith.constant 5 : index
    %c0_33 = arith.constant 0 : index
    %c0_34 = arith.constant 0 : index
    %113 = vector.load %arg0[%c5, %c0_33, %c0_34] : memref<8x8x512xf32, #tpu.memory_space<vmem>>, vector<1x8x512xf32>
    %114 = vector.shape_cast %113 : vector<1x8x512xf32> to vector<8x512xf32>
    %cst_35 = arith.constant dense<0.000000e+00> : vector<8x512xf32>
    %115 = tpu.matmul %112, %0, %cst_35 {dimension_numbers = #tpu.dot_dimension_numbers<[1], [0], [0], [1], [0, 0, 1, 1], [], []>} : vector<8x128xf32>, vector<128x512xf32>, vector<8x512xf32> -> vector<8x512xf32>
    %116 = arith.addf %114, %115 : vector<8x512xf32>
    %117 = vector.extract_strided_slice %116 {offsets = [0, 0], sizes = [8, 384], strides = [1, 1]} : vector<8x512xf32> to vector<8x384xf32>
    %cst_36 = arith.constant 5.000000e-01 : f32
    %118 = vector.broadcast %cst_36 : f32 to vector<8x384xf32>
    %119 = arith.mulf %118, %117 : vector<8x384xf32>
    %120 = math.tanh %119 : vector<8x384xf32>
    %cst_37 = arith.constant 1.000000e+00 : f32
    %121 = vector.broadcast %cst_37 : f32 to vector<8x384xf32>
    %122 = arith.addf %120, %121 : vector<8x384xf32>
    %cst_38 = arith.constant 5.000000e-01 : f32
    %123 = vector.broadcast %cst_38 : f32 to vector<8x384xf32>
    %124 = arith.mulf %123, %122 : vector<8x384xf32>
    %125 = vector.extract_strided_slice %116 {offsets = [0, 384], sizes = [8, 128], strides = [1, 1]} : vector<8x512xf32> to vector<8x128xf32>
    %126 = math.tanh %125 : vector<8x128xf32>
    %127 = vector.extract_strided_slice %124 {offsets = [0, 128], sizes = [8, 128], strides = [1, 1]} : vector<8x384xf32> to vector<8x128xf32>
    %128 = arith.mulf %127, %109 : vector<8x128xf32>
    %129 = vector.extract_strided_slice %124 {offsets = [0, 0], sizes = [8, 128], strides = [1, 1]} : vector<8x384xf32> to vector<8x128xf32>
    %130 = arith.mulf %129, %126 : vector<8x128xf32>
    %131 = arith.addf %128, %130 : vector<8x128xf32>
    %132 = vector.extract_strided_slice %124 {offsets = [0, 256], sizes = [8, 128], strides = [1, 1]} : vector<8x384xf32> to vector<8x128xf32>
    %133 = math.tanh %131 : vector<8x128xf32>
    %134 = arith.mulf %132, %133 : vector<8x128xf32>
    %c6 = arith.constant 6 : index
    %c0_39 = arith.constant 0 : index
    %c0_40 = arith.constant 0 : index
    %135 = vector.load %arg0[%c6, %c0_39, %c0_40] : memref<8x8x512xf32, #tpu.memory_space<vmem>>, vector<1x8x512xf32>
    %136 = vector.shape_cast %135 : vector<1x8x512xf32> to vector<8x512xf32>
    %cst_41 = arith.constant dense<0.000000e+00> : vector<8x512xf32>
    %137 = tpu.matmul %134, %0, %cst_41 {dimension_numbers = #tpu.dot_dimension_numbers<[1], [0], [0], [1], [0, 0, 1, 1], [], []>} : vector<8x128xf32>, vector<128x512xf32>, vector<8x512xf32> -> vector<8x512xf32>
    %138 = arith.addf %136, %137 : vector<8x512xf32>
    %139 = vector.extract_strided_slice %138 {offsets = [0, 0], sizes = [8, 384], strides = [1, 1]} : vector<8x512xf32> to vector<8x384xf32>
    %cst_42 = arith.constant 5.000000e-01 : f32
    %140 = vector.broadcast %cst_42 : f32 to vector<8x384xf32>
    %141 = arith.mulf %140, %139 : vector<8x384xf32>
    %142 = math.tanh %141 : vector<8x384xf32>
    %cst_43 = arith.constant 1.000000e+00 : f32
    %143 = vector.broadcast %cst_43 : f32 to vector<8x384xf32>
    %144 = arith.addf %142, %143 : vector<8x384xf32>
    %cst_44 = arith.constant 5.000000e-01 : f32
    %145 = vector.broadcast %cst_44 : f32 to vector<8x384xf32>
    %146 = arith.mulf %145, %144 : vector<8x384xf32>
    %147 = vector.extract_strided_slice %138 {offsets = [0, 384], sizes = [8, 128], strides = [1, 1]} : vector<8x512xf32> to vector<8x128xf32>
    %148 = math.tanh %147 : vector<8x128xf32>
    %149 = vector.extract_strided_slice %146 {offsets = [0, 128], sizes = [8, 128], strides = [1, 1]} : vector<8x384xf32> to vector<8x128xf32>
    %150 = arith.mulf %149, %131 : vector<8x128xf32>
    %151 = vector.extract_strided_slice %146 {offsets = [0, 0], sizes = [8, 128], strides = [1, 1]} : vector<8x384xf32> to vector<8x128xf32>
    %152 = arith.mulf %151, %148 : vector<8x128xf32>
    %153 = arith.addf %150, %152 : vector<8x128xf32>
    %154 = vector.extract_strided_slice %146 {offsets = [0, 256], sizes = [8, 128], strides = [1, 1]} : vector<8x384xf32> to vector<8x128xf32>
    %155 = math.tanh %153 : vector<8x128xf32>
    %156 = arith.mulf %154, %155 : vector<8x128xf32>
    %c7 = arith.constant 7 : index
    %c0_45 = arith.constant 0 : index
    %c0_46 = arith.constant 0 : index
    %157 = vector.load %arg0[%c7, %c0_45, %c0_46] : memref<8x8x512xf32, #tpu.memory_space<vmem>>, vector<1x8x512xf32>
    %158 = vector.shape_cast %157 : vector<1x8x512xf32> to vector<8x512xf32>
    %cst_47 = arith.constant dense<0.000000e+00> : vector<8x512xf32>
    %159 = tpu.matmul %156, %0, %cst_47 {dimension_numbers = #tpu.dot_dimension_numbers<[1], [0], [0], [1], [0, 0, 1, 1], [], []>} : vector<8x128xf32>, vector<128x512xf32>, vector<8x512xf32> -> vector<8x512xf32>
    %160 = arith.addf %158, %159 : vector<8x512xf32>
    %161 = vector.extract_strided_slice %160 {offsets = [0, 0], sizes = [8, 384], strides = [1, 1]} : vector<8x512xf32> to vector<8x384xf32>
    %cst_48 = arith.constant 5.000000e-01 : f32
    %162 = vector.broadcast %cst_48 : f32 to vector<8x384xf32>
    %163 = arith.mulf %162, %161 : vector<8x384xf32>
    %164 = math.tanh %163 : vector<8x384xf32>
    %cst_49 = arith.constant 1.000000e+00 : f32
    %165 = vector.broadcast %cst_49 : f32 to vector<8x384xf32>
    %166 = arith.addf %164, %165 : vector<8x384xf32>
    %cst_50 = arith.constant 5.000000e-01 : f32
    %167 = vector.broadcast %cst_50 : f32 to vector<8x384xf32>
    %168 = arith.mulf %167, %166 : vector<8x384xf32>
    %169 = vector.extract_strided_slice %160 {offsets = [0, 384], sizes = [8, 128], strides = [1, 1]} : vector<8x512xf32> to vector<8x128xf32>
    %170 = math.tanh %169 : vector<8x128xf32>
    %171 = vector.extract_strided_slice %168 {offsets = [0, 128], sizes = [8, 128], strides = [1, 1]} : vector<8x384xf32> to vector<8x128xf32>
    %172 = arith.mulf %171, %153 : vector<8x128xf32>
    %173 = vector.extract_strided_slice %168 {offsets = [0, 0], sizes = [8, 128], strides = [1, 1]} : vector<8x384xf32> to vector<8x128xf32>
    %174 = arith.mulf %173, %170 : vector<8x128xf32>
    %175 = arith.addf %172, %174 : vector<8x128xf32>
    %176 = vector.extract_strided_slice %168 {offsets = [0, 256], sizes = [8, 128], strides = [1, 1]} : vector<8x384xf32> to vector<8x128xf32>
    %177 = math.tanh %175 : vector<8x128xf32>
    %178 = arith.mulf %176, %177 : vector<8x128xf32>
    %c0_51 = arith.constant 0 : index
    %c0_52 = arith.constant 0 : index
    %179 = vector.load %arg2[%c0_51, %c0_52] : memref<128x128xf32, #tpu.memory_space<vmem>>, vector<128x128xf32>
    %cst_53 = arith.constant dense<0.000000e+00> : vector<8x128xf32>
    %180 = tpu.matmul %178, %179, %cst_53 {dimension_numbers = #tpu.dot_dimension_numbers<[1], [0], [0], [1], [0, 0, 1, 1], [], []>} : vector<8x128xf32>, vector<128x128xf32>, vector<8x128xf32> -> vector<8x128xf32>
    %c0_54 = arith.constant 0 : index
    %c0_55 = arith.constant 0 : index
    %181 = vector.load %arg3[%c0_54, %c0_55] : memref<1x128xf32, #tpu.memory_space<vmem>>, vector<1x128xf32>
    %182 = vector.broadcast %181 : vector<1x128xf32> to vector<8x128xf32>
    %183 = arith.addf %180, %182 : vector<8x128xf32>
    %184 = math.tanh %183 : vector<8x128xf32>
    %c0_56 = arith.constant 0 : index
    %c0_57 = arith.constant 0 : index
    %185 = vector.load %arg4[%c0_56, %c0_57] : memref<128x128xf32, #tpu.memory_space<vmem>>, vector<128x128xf32>
    %cst_58 = arith.constant dense<0.000000e+00> : vector<8x128xf32>
    %186 = tpu.matmul %184, %185, %cst_58 {dimension_numbers = #tpu.dot_dimension_numbers<[1], [0], [0], [1], [0, 0, 1, 1], [], []>} : vector<8x128xf32>, vector<128x128xf32>, vector<8x128xf32> -> vector<8x128xf32>
    %c0_59 = arith.constant 0 : index
    %c0_60 = arith.constant 0 : index
    %187 = vector.load %arg5[%c0_59, %c0_60] : memref<1x128xf32, #tpu.memory_space<vmem>>, vector<1x128xf32>
    %188 = vector.broadcast %187 : vector<1x128xf32> to vector<8x128xf32>
    %189 = arith.addf %186, %188 : vector<8x128xf32>
    %cst_61 = arith.constant dense<0xFF800000> : vector<8xf32>
    %190 = vector.multi_reduction <maximumf>, %189, %cst_61 [1] : vector<8x128xf32> to vector<8xf32>
    %191 = vector.shape_cast %190 : vector<8xf32> to vector<8x1xf32>
    %192 = vector.broadcast %191 : vector<8x1xf32> to vector<8x128xf32>
    %193 = arith.subf %189, %192 : vector<8x128xf32>
    %194 = math.exp %193 : vector<8x128xf32>
    %cst_62 = arith.constant dense<0.000000e+00> : vector<8xf32>
    %195 = vector.multi_reduction <add>, %194, %cst_62 [1] : vector<8x128xf32> to vector<8xf32>
    %196 = vector.shape_cast %195 : vector<8xf32> to vector<8x1xf32>
    %197 = math.log %196 : vector<8x1xf32>
    %198 = vector.broadcast %197 : vector<8x1xf32> to vector<8x128xf32>
    %199 = arith.subf %193, %198 : vector<8x128xf32>
    %c0_63 = arith.constant 0 : index
    %c0_64 = arith.constant 0 : index
    %200 = vector.load %arg6[%c0_63, %c0_64] : memref<8x128xf32, #tpu.memory_space<vmem>>, vector<8x128xf32>
    tpu.vector_store %arg6[%c0_63, %c0_64], %199 {strides = array<i32>} : memref<8x128xf32, #tpu.memory_space<vmem>>, vector<8x128xf32>,
    return
  }
}

</mosaic_0001>

<bundles_post_ra>
// kernel: lstm_forward.1
= control target key start
LH: loop header
LB: loop body
LE: loop exit
PB: predicated region body
PF: predicated region fallthrough
CT: control target
= control target key end

     0   :  { %v2423_v3 = vmov 0.0   ;;  %vm2425_vm0 = vmmov 0   ;;  %s3238_s1 = inlined_call_operand.vmem [shape: f32[128,512], index: 1, kind: input, shape index: {}]   ;;  %s3239_s0 = inlined_call_operand.vmem [shape: f32[8,8,512], index: 0, kind: input, shape index: {}]   ;;  %s3240_s2 = inlined_call_operand.vmem [shape: f32[128,128], index: 2, kind: input, shape index: {}]   ;;  %s3241_s4 = inlined_call_operand.vmem [shape: f32[128,128], index: 4, kind: input, shape index: {}]   ;;  %s3242_s3 = inlined_call_operand.vmem [shape: f32[1,128], index: 3, kind: input, shape index: {}]   ;;  %s3243_s5 = inlined_call_operand.vmem [shape: f32[1,128], index: 5, kind: input, shape index: {}]   ;;  %s3244_s6 = inlined_call_operand.vmem [shape: f32[8,128], index: 6, kind: output, shape index: {}]  }
   0x1   :  { %v24_v0 = vld [vmem:[%s3238_s1 + $0x8] sm:$0xff]  ;;  %v23_v2 = vld [vmem:[%s3238_s1] sm:$0xff]  ;;  %155 = vmatprep.mubr.f32.mxu0 %v2423_v3  ;;  %226 = vmatprep.mubr.f32.mxu1 %v2423_v3  ;;  %v26_v12 = vld [vmem:[%s3238_s1 + $0x18] sm:$0xff] }
   0x2   :  { %v28_v1 = vld [vmem:[%s3238_s1 + $0x28] sm:$0xff]  ;;  %v27_v5 = vld [vmem:[%s3238_s1 + $0x20] sm:$0xff]  ;;  %v30_v13 = vld [vmem:[%s3238_s1 + $0x38] sm:$0xff] }
   0x3   :  { %v2472_v4 = vpack.c.bf16 %v28_v1, %v24_v0  ;;  %v32_v6 = vld [vmem:[%s3238_s1 + $0x48] sm:$0xff]  ;;  %v2483_v8 = vpack.c.bf16 %v27_v5, %v23_v2  ;;  %v31_v10 = vld [vmem:[%s3238_s1 + $0x40] sm:$0xff]  ;;  %v25_v14 = vld [vmem:[%s3238_s1 + $0x10] sm:$0xff]  ;;  %v2509_v17 = vpack.c.bf16 %v30_v13, %v26_v12 }
   0x4   :  { %v36_v7 = vld [vmem:[%s3238_s1 + $0x68] sm:$0xff]  ;;  %v35_v11 = vld [vmem:[%s3238_s1 + $0x60] sm:$0xff]  ;;  %v29_v15 = vld [vmem:[%s3238_s1 + $0x30] sm:$0xff] }
   0x5   :  { %v2485_v9 = vpack.c.bf16 %v36_v7, %v32_v6  ;;  %1775 = vmatprep.subr.bf16.mxu0 %v2472_v4  ;;  %v2507_v16 = vpack.c.bf16 %v35_v11, %v31_v10  ;;  %v2511_v18 = vpack.c.bf16 %v29_v15, %v25_v14  ;;  %v40_v19 = vld [vmem:[%s3238_s1 + $0x88] sm:$0xff]  ;;  %v39_v21 = vld [vmem:[%s3238_s1 + $0x80] sm:$0xff]  ;;  %v34_v24 = vld [vmem:[%s3238_s1 + $0x58] sm:$0xff]  ;;  %1807 = vmatprep.subr.bf16.mxu1 %v2509_v17 }
   0x6   :  { %1777 = vmatpush1.bf16.msra.mxu0 %v2483_v8  ;;  %v44_v20 = vld [vmem:[%s3238_s1 + $0xa8] sm:$0xff]  ;;  %v43_v23 = vld [vmem:[%s3238_s1 + $0xa0] sm:$0xff]  ;;  %v38_v25 = vld [vmem:[%s3238_s1 + $0x78] sm:$0xff] }
   0x7   :  { %1779 = vmatprep.subr.bf16.mxu0 %v2485_v9  ;;  %v2523_v22 = vpack.c.bf16 %v44_v20, %v40_v19  ;;  %v2535_v26 = vpack.c.bf16 %v38_v25, %v34_v24  ;;  %v33_v27 = vld [vmem:[%s3238_s1 + $0x50] sm:$0xff]  ;;  %v48_v29 = vld [vmem:[%s3238_s1 + $0xc8] sm:$0xff]  ;;  %1809 = vmatpush1.bf16.msra.mxu1 %v2511_v18  ;;  %v2553_v32 = vpack.c.bf16 %v43_v23, %v39_v21  ;;  %v42_v33 = vld [vmem:[%s3238_s1 + $0x98] sm:$0xff] }
   0x8   :  { %v37_v28 = vld [vmem:[%s3238_s1 + $0x70] sm:$0xff]  ;;  %v52_v31 = vld [vmem:[%s3238_s1 + $0xe8] sm:$0xff]  ;;  %v46_v34 = vld [vmem:[%s3238_s1 + $0xb8] sm:$0xff] }
   0x9   :  { %v2547_v30 = vpack.c.bf16 %v37_v28, %v33_v27  ;;  %1811 = vmatprep.subr.bf16.mxu1 %v2535_v26  ;;  %v41_v35 = vld [vmem:[%s3238_s1 + $0x90] sm:$0xff]  ;;  %v2566_v36 = vpack.c.bf16 %v52_v31, %v48_v29  ;;  %v47_v37 = vld [vmem:[%s3238_s1 + $0xc0] sm:$0xff]  ;;  %v2574_v39 = vpack.c.bf16 %v46_v34, %v42_v33  ;;  %v56_v41 = vld [vmem:[%s3238_s1 + $0x108] sm:$0xff] }
   0xa   :  { %1781 = vmatpush1.bf16.msra.mxu0 %v2507_v16  ;;  %v51_v38 = vld [vmem:[%s3238_s1 + $0xe0] sm:$0xff]  ;;  %v45_v40 = vld [vmem:[%s3238_s1 + $0xb0] sm:$0xff]  ;;  %v60_v42 = vld [vmem:[%s3238_s1 + $0x128] sm:$0xff] }
   0xb   :  { %1783 = vmatprep.subr.bf16.mxu0 %v2523_v22  ;;  %v50_v43 = vld [vmem:[%s3238_s1 + $0xd8] sm:$0xff]  ;;  %1813 = vmatpush1.bf16.msra.mxu1 %v2547_v30  ;;  %v2589_v44 = vpack.c.bf16 %v45_v40, %v41_v35  ;;  %v2595_v46 = vpack.c.bf16 %v51_v38, %v47_v37  ;;  %v55_v47 = vld [vmem:[%s3238_s1 + $0x100] sm:$0xff]  ;;  %v49_v49 = vld [vmem:[%s3238_s1 + $0xd0] sm:$0xff]  ;;  %v2610_v51 = vpack.c.bf16 %v60_v42, %v56_v41 }
   0xc   :  { %v54_v45 = vld [vmem:[%s3238_s1 + $0xf8] sm:$0xff]  ;;  %1815 = vmatprep.subr.bf16.mxu1 %v2574_v39  ;;  %v53_v50 = vld [vmem:[%s3238_s1 + $0xf0] sm:$0xff]  ;;  %v59_v52 = vld [vmem:[%s3238_s1 + $0x120] sm:$0xff] }
   0xd   :  { %v2601_v48 = vpack.c.bf16 %v54_v45, %v50_v43  ;;  %v58_v53 = vld [vmem:[%s3238_s1 + $0x118] sm:$0xff]  ;;  %v64_v55 = vld [vmem:[%s3238_s1 + $0x148] sm:$0xff]  ;;  %v2628_v57 = vpack.c.bf16 %v53_v50, %v49_v49  ;;  %v2631_v58 = vpack.c.bf16 %v59_v52, %v55_v47  ;;  %v63_v59 = vld [vmem:[%s3238_s1 + $0x140] sm:$0xff] }
   0xe   :  { %1785 = vmatpush1.bf16.msra.mxu0 %v2553_v32  ;;  %v62_v54 = vld [vmem:[%s3238_s1 + $0x138] sm:$0xff]  ;;  %v68_v56 = vld [vmem:[%s3238_s1 + $0x168] sm:$0xff]  ;;  %v57_v61 = vld [vmem:[%s3238_s1 + $0x110] sm:$0xff] }
   0xf   :  { %1787 = vmatprep.subr.bf16.mxu0 %v2566_v36  ;;  %1817 = vmatpush1.bf16.msra.mxu1 %v2589_v44  ;;  %v2637_v60 = vpack.c.bf16 %v62_v54, %v58_v53  ;;  %v61_v62 = vld [vmem:[%s3238_s1 + $0x130] sm:$0xff]  ;;  %v2646_v63 = vpack.c.bf16 %v68_v56, %v64_v55  ;;  %v67_v0 = vld [vmem:[%s3238_s1 + $0x160] sm:$0xff]  ;;  %v66_v1 = vld [vmem:[%s3238_s1 + $0x158] sm:$0xff] }
  0x10   :  { %1819 = vmatprep.subr.bf16.mxu1 %v2601_v48  ;;  %v70_v2 = vld [vmem:[%s3238_s1 + $0x178] sm:$0xff]  ;;  %v72_v5 = vld [vmem:[%s3238_s1 + $0x188] sm:$0xff]  ;;  %v2664_v7 = vpack.c.bf16 %v61_v62, %v57_v61  ;;  %v2667_v10 = vpack.c.bf16 %v67_v0, %v63_v59  ;;  %v71_v11 = vld [vmem:[%s3238_s1 + $0x180] sm:$0xff] }
  0x11   :  { %v76_v6 = vld [vmem:[%s3238_s1 + $0x1a8] sm:$0xff]  ;;  %v2673_v12 = vpack.c.bf16 %v70_v2, %v66_v1  ;;  %v65_v13 = vld [vmem:[%s3238_s1 + $0x150] sm:$0xff]  ;;  %v75_v19 = vld [vmem:[%s3238_s1 + $0x1a0] sm:$0xff] }
  0x12   :  { %1789 = vmatpush1.bf16.msra.mxu0 %v2595_v46  ;;  %v69_v14 = vld [vmem:[%s3238_s1 + $0x170] sm:$0xff]  ;;  %v2682_v15 = vpack.c.bf16 %v76_v6, %v72_v5  ;;  %v74_v20 = vld [vmem:[%s3238_s1 + $0x198] sm:$0xff]  ;;  %v80_v23 = vld [vmem:[%s3238_s1 + $0x1c8] sm:$0xff]  ;;  %v2703_v27 = vpack.c.bf16 %v75_v19, %v71_v11 }
  0x13   :  { %1791 = vmatprep.subr.bf16.mxu0 %v2610_v51  ;;  %1821 = vmatpush1.bf16.msra.mxu1 %v2628_v57  ;;  %v78_v21 = vld [vmem:[%s3238_s1 + $0x1b8] sm:$0xff]  ;;  %v84_v24 = vld [vmem:[%s3238_s1 + $0x1e8] sm:$0xff]  ;;  %v2700_v25 = vpack.c.bf16 %v69_v14, %v65_v13  ;;  %v79_v28 = vld [vmem:[%s3238_s1 + $0x1c0] sm:$0xff] }
  0x14   :  { %1823 = vmatprep.subr.bf16.mxu1 %v2637_v60  ;;  %v2709_v29 = vpack.c.bf16 %v78_v21, %v74_v20  ;;  %v73_v31 = vld [vmem:[%s3238_s1 + $0x190] sm:$0xff]  ;;  %v2718_v34 = vpack.c.bf16 %v84_v24, %v80_v23  ;;  %v83_v35 = vld [vmem:[%s3238_s1 + $0x1e0] sm:$0xff]  ;;  %v82_v37 = vld [vmem:[%s3238_s1 + $0x1d8] sm:$0xff] }
  0x15   :  { %v77_v33 = vld [vmem:[%s3238_s1 + $0x1b0] sm:$0xff]  ;;  %v86_v38 = vld [vmem:[%s3238_s1 + $0x1f8] sm:$0xff]  ;;  %v2733_v41 = vpack.c.bf16 %v83_v35, %v79_v28  ;;  %v87_v49 = vld [vmem:[%s3239_s0] sm:$0xff] }
  0x16   :  { %1793 = vmatpush1.bf16.msra.mxu0 %v2631_v58  ;;  %v2730_v40 = vpack.c.bf16 %v77_v33, %v73_v31  ;;  %v2736_v42 = vpack.c.bf16 %v86_v38, %v82_v37  ;;  %v81_v43 = vld [vmem:[%s3238_s1 + $0x1d0] sm:$0xff]  ;;  %v88_v50 = vld [vmem:[%s3239_s0 + $0x8] sm:$0xff]  ;;  %v90_v56 = vld [vmem:[%s3239_s0 + $0x18] sm:$0xff] }
  0x17   :  { %1795 = vmatprep.subr.bf16.mxu0 %v2646_v63  ;;  %1825 = vmatpush1.bf16.msra.mxu1 %v2664_v7  ;;  %v85_v45 = vld [vmem:[%s3238_s1 + $0x1f0] sm:$0xff] }
  0x18   :  { %1827 = vmatprep.subr.bf16.mxu1 %v2673_v12  ;;  %v2746_v47 = vpack.c.bf16 %v85_v45, %v81_v43  ;;  %v89_v2 = vld [vmem:[%s3239_s0 + $0x10] sm:$0xff]  ;;  %v1640_v45 = vld [vmem:[%s3239_s0 + $0x20] sm:$0xff] }
  0x1a   :  { %1797 = vmatpush1.bf16.msra.mxu0 %v2667_v10 }
  0x1b   :  { %1799 = vmatprep.subr.bf16.mxu0 %v2682_v15  ;;  %1829 = vmatpush1.bf16.msra.mxu1 %v2700_v25 }
  0x1c   :  { %1831 = vmatprep.subr.bf16.mxu1 %v2709_v29 }
  0x1e   :  { %1801 = vmatpush1.bf16.msra.mxu0 %v2703_v27 }
  0x1f   :  { %1803 = vmatprep.subr.bf16.mxu0 %v2718_v34  ;;  %1833 = vmatpush1.bf16.msra.mxu1 %v2730_v40 }
  0x20   :  { %1835 = vmatprep.subr.bf16.mxu1 %v2736_v42 }
  0x22   :  { %1805 = vmatpush1.bf16.msra.mxu0 %v2733_v41 }
  0x23   :  { %1839 = vmatprep.subr.bf16.mxu0 %v2472_v4  ;;  %1837 = vmatpush1.bf16.msra.mxu1 %v2746_v47 }
  0x24   :  { %1871 = vmatprep.subr.bf16.mxu1 %v2509_v17 }
  0x25   :  { %156 = vmatmul.mubr.f32.vlgmr.msra.gmra.mrb[0].mxu0 %v2423_v3 }
  0x26   :  { %1841 = vmatpush1.bf16.msra.mxu0 %v2483_v8  ;;  %324 = vmatprep.mubr.f32.mxu0 %v2423_v3 }
  0x27   :  { %1843 = vmatprep.subr.bf16.mxu0 %v2485_v9  ;;  %227 = vmatmul.mubr.f32.vlgmr.msra.gmra.mrb[0].mxu1 %v2423_v3 }
  0x28   :  { %1873 = vmatpush1.bf16.msra.mxu1 %v2511_v18  ;;  %395 = vmatprep.mubr.f32.mxu1 %v2423_v3 }
  0x29   :  { %1875 = vmatprep.subr.bf16.mxu1 %v2535_v26 }
  0x2a   :  { %1845 = vmatpush1.bf16.msra.mxu0 %v2507_v16 }
  0x2b   :  { %1847 = vmatprep.subr.bf16.mxu0 %v2523_v22 }
  0x2c   :  { %1877 = vmatpush1.bf16.msra.mxu1 %v2547_v30 }
  0x2d   :  { %1879 = vmatprep.subr.bf16.mxu1 %v2574_v39 }
  0x2e   :  { %1849 = vmatpush1.bf16.msra.mxu0 %v2553_v32 }
  0x2f   :  { %1851 = vmatprep.subr.bf16.mxu0 %v2566_v36 }
  0x30   :  { %1881 = vmatpush1.bf16.msra.mxu1 %v2589_v44 }
  0x31   :  { %1883 = vmatprep.subr.bf16.mxu1 %v2601_v48 }
  0x32   :  { %1853 = vmatpush1.bf16.msra.mxu0 %v2595_v46 }
  0x33   :  { %1855 = vmatprep.subr.bf16.mxu0 %v2610_v51 }
  0x34   :  { %1885 = vmatpush1.bf16.msra.mxu1 %v2628_v57 }
  0x35   :  { %1887 = vmatprep.subr.bf16.mxu1 %v2637_v60 }
  0x36   :  { %1857 = vmatpush1.bf16.msra.mxu0 %v2631_v58 }
  0x37   :  { %1859 = vmatprep.subr.bf16.mxu0 %v2646_v63 }
  0x38   :  { %1889 = vmatpush1.bf16.msra.mxu1 %v2664_v7 }
  0x39   :  { %1891 = vmatprep.subr.bf16.mxu1 %v2673_v12 }
  0x3a   :  { %1861 = vmatpush1.bf16.msra.mxu0 %v2667_v10 }
  0x3b   :  { %1863 = vmatprep.subr.bf16.mxu0 %v2682_v15 }
  0x3c   :  { %1893 = vmatpush1.bf16.msra.mxu1 %v2700_v25 }
  0x3d   :  { %1895 = vmatprep.subr.bf16.mxu1 %v2709_v29 }
  0x3e   :  { %1865 = vmatpush1.bf16.msra.mxu0 %v2703_v27 }
  0x3f   :  { %1867 = vmatprep.subr.bf16.mxu0 %v2718_v34 }
  0x40   :  { %1897 = vmatpush1.bf16.msra.mxu1 %v2730_v40 }
  0x41   :  { %1899 = vmatprep.subr.bf16.mxu1 %v2736_v42 }
  0x42   :  { %1869 = vmatpush1.bf16.msra.mxu0 %v2733_v41 }
  0x43   :  { %1903 = vmatprep.subr.bf16.mxu0 %v2472_v4 }
  0x44   :  { %1901 = vmatpush1.bf16.msra.mxu1 %v2746_v47 }
  0x45   :  { %1935 = vmatprep.subr.bf16.mxu1 %v2509_v17 }
  0xf8   :  { %v157_v52 = vpop.f32.mrb[0].mxu0 }
  0xf9   :  { %v233_v53 = vadd.f32 %v157_v52, %v87_v49  ;;  %v159_v54 = vpop.f32.mrb[1].mxu0  ;;  %v1641_v49 = vld [vmem:[%s3239_s0 + $0x28] sm:$0xff] }
  0xfa   :  { %v234_v55 = vadd.f32 %v159_v54, %v88_v50  ;;  %v228_v61 = vpop.f32.mrb[0].mxu1 }
  0xfb   :  { %v237_v59 = vmul.f32 0.5, %v233_v53  ;;  %v230_v0 = vpop.f32.mrb[1].mxu1  ;;  %v235_v5 = vadd.f32 %v228_v61, %v89_v2 }
  0xfc   :  { %v238_v62 = vmul.f32 0.5, %v234_v55  ;;  %v236_v1 = vadd.f32 %v230_v0, %v90_v56 }
  0xfd   :  { %2337 = vtanh.f32 %v237_v59  ;;  %v239_v6 = vmul.f32 0.5, %v235_v5  ;;  %v1643_v59 = vld [vmem:[%s3239_s0 + $0x38] sm:$0xff] }
  0xfe   :  { %2339 = vtanh.f32 %v238_v62 }
  0xff   :  { %2341 = vtanh.f32 %v236_v1  ;;  %v1642_v1 = vld [vmem:[%s3239_s0 + $0x30] sm:$0xff] }
 0x100   :  { %2343 = vtanh.f32 %v239_v6 }
 0x107   :  { %v2338_v11 = vpop.eup %2337 }
 0x108   :  { %v2340_v13 = vpop.eup %2339  ;;  %v243_v14 = vadd.f32 1.0, %v2338_v11 }
 0x109   :  { %v2342_v19 = vpop.eup %2341  ;;  %v244_v20 = vadd.f32 1.0, %v2340_v13 }
 0x10a   :  { %v246_v21 = vmul.f32 0.5, %v243_v14  ;;  %v2344_v33 = vpop.eup %2343 }
 0x10b   :  { %v247_v23 = vmul.f32 0.5, %v244_v20  ;;  %v245_v35 = vadd.f32 1.0, %v2344_v33 }
 0x10c   :  { %v251_v24 = vmul.f32 %v2342_v19, %v246_v21 }
 0x10d   :  { %v250_v28 = vmul.f32 0.0, %v247_v23  ;;  %v248_v37 = vmul.f32 0.5, %v245_v35 }
 0x10f   :  { %v2801_v31 = vadd.f32 %v251_v24, %v250_v28 }
 0x111   :  { %2345 = vtanh.f32 %v2801_v31 }
 0x11b   :  { %v2346_v38 = vpop.eup %2345 }
 0x11c   :  { %v254_v43 = vmul.f32 %v2346_v38, %v248_v37 }
 0x11e   :  { %325 = vmatmul.mubr.f32.vlgmr.msra.gmra.mrb[2].mxu0 %v254_v43  ;;  %396 = vmatmul.mubr.f32.vlgmr.msra.gmra.mrb[2].mxu1 %v254_v43 }
 0x11f   :  { %1905 = vmatpush1.bf16.msra.mxu0 %v2483_v8  ;;  %1937 = vmatpush1.bf16.msra.mxu1 %v2511_v18 }
 0x120   :  { %1907 = vmatprep.subr.bf16.mxu0 %v2485_v9  ;;  %1939 = vmatprep.subr.bf16.mxu1 %v2535_v26 }
 0x121   :  { %493 = vmatprep.mubr.f32.mxu0 %v2423_v3  ;;  %564 = vmatprep.mubr.f32.mxu1 %v2423_v3 }
 0x123   :  { %1909 = vmatpush1.bf16.msra.mxu0 %v2507_v16  ;;  %1941 = vmatpush1.bf16.msra.mxu1 %v2547_v30 }
 0x124   :  { %1911 = vmatprep.subr.bf16.mxu0 %v2523_v22  ;;  %1943 = vmatprep.subr.bf16.mxu1 %v2574_v39 }
 0x127   :  { %1913 = vmatpush1.bf16.msra.mxu0 %v2553_v32  ;;  %1945 = vmatpush1.bf16.msra.mxu1 %v2589_v44 }
 0x128   :  { %1915 = vmatprep.subr.bf16.mxu0 %v2566_v36  ;;  %1947 = vmatprep.subr.bf16.mxu1 %v2601_v48 }
 0x12b   :  { %1917 = vmatpush1.bf16.msra.mxu0 %v2595_v46  ;;  %1949 = vmatpush1.bf16.msra.mxu1 %v2628_v57 }
 0x12c   :  { %1919 = vmatprep.subr.bf16.mxu0 %v2610_v51  ;;  %1951 = vmatprep.subr.bf16.mxu1 %v2637_v60 }
 0x12f   :  { %1921 = vmatpush1.bf16.msra.mxu0 %v2631_v58  ;;  %1953 = vmatpush1.bf16.msra.mxu1 %v2664_v7 }
 0x130   :  { %1923 = vmatprep.subr.bf16.mxu0 %v2646_v63  ;;  %1955 = vmatprep.subr.bf16.mxu1 %v2673_v12 }
 0x133   :  { %1925 = vmatpush1.bf16.msra.mxu0 %v2667_v10  ;;  %1957 = vmatpush1.bf16.msra.mxu1 %v2700_v25 }
 0x134   :  { %1927 = vmatprep.subr.bf16.mxu0 %v2682_v15  ;;  %1959 = vmatprep.subr.bf16.mxu1 %v2709_v29 }
 0x137   :  { %1929 = vmatpush1.bf16.msra.mxu0 %v2703_v27  ;;  %1961 = vmatpush1.bf16.msra.mxu1 %v2730_v40 }
 0x138   :  { %1931 = vmatprep.subr.bf16.mxu0 %v2718_v34  ;;  %1963 = vmatprep.subr.bf16.mxu1 %v2736_v42 }
 0x13b   :  { %1933 = vmatpush1.bf16.msra.mxu0 %v2733_v41  ;;  %1965 = vmatpush1.bf16.msra.mxu1 %v2746_v47 }
 0x13c   :  { %1967 = vmatprep.subr.bf16.mxu0 %v2472_v4  ;;  %1999 = vmatprep.subr.bf16.mxu1 %v2509_v17 }
 0x1f1   :  { %v326_v50 = vpop.f32.mrb[2].mxu0  ;;  %v397_v52 = vpop.f32.mrb[2].mxu1 }
 0x1f2   :  { %v402_v53 = vadd.f32 %v1640_v45, %v326_v50  ;;  %v328_v54 = vpop.f32.mrb[3].mxu0  ;;  %v399_v55 = vpop.f32.mrb[3].mxu1  ;;  %v404_v2 = vadd.f32 %v1642_v1, %v397_v52  ;;  %v1645_v45 = vld [vmem:[%s3239_s0 + $0x48] sm:$0xff] }
 0x1f3   :  { %v403_v56 = vadd.f32 %v1641_v49, %v328_v54  ;;  %v405_v0 = vadd.f32 %v1643_v59, %v399_v55 }
 0x1f4   :  { %v406_v61 = vmul.f32 0.5, %v402_v53  ;;  %v408_v5 = vmul.f32 0.5, %v404_v2 }
 0x1f5   :  { %v407_v62 = vmul.f32 0.5, %v403_v56  ;;  %v1647_v56 = vld [vmem:[%s3239_s0 + $0x58] sm:$0xff] }
 0x1f6   :  { %2347 = vtanh.f32 %v406_v61 }
 0x1f7   :  { %2349 = vtanh.f32 %v407_v62 }
 0x1f8   :  { %2351 = vtanh.f32 %v405_v0  ;;  %v1646_v0 = vld [vmem:[%s3239_s0 + $0x50] sm:$0xff] }
 0x1f9   :  { %2353 = vtanh.f32 %v408_v5 }
 0x200   :  { %v2348_v6 = vpop.eup %2347 }
 0x201   :  { %v412_v11 = vadd.f32 1.0, %v2348_v6  ;;  %v2350_v13 = vpop.eup %2349 }
 0x202   :  { %v413_v19 = vadd.f32 1.0, %v2350_v13  ;;  %v2352_v20 = vpop.eup %2351 }
 0x203   :  { %v415_v14 = vmul.f32 0.5, %v412_v11  ;;  %v2354_v33 = vpop.eup %2353 }
 0x204   :  { %v416_v21 = vmul.f32 0.5, %v413_v19  ;;  %v414_v35 = vadd.f32 1.0, %v2354_v33 }
 0x205   :  { %v420_v23 = vmul.f32 %v2352_v20, %v415_v14 }
 0x206   :  { %v419_v24 = vmul.f32 %v416_v21, %v2801_v31  ;;  %v417_v37 = vmul.f32 0.5, %v414_v35  ;;  %v1644_v31 = vld [vmem:[%s3239_s0 + $0x40] sm:$0xff] }
 0x208   :  { %v2851_v28 = vadd.f32 %v420_v23, %v419_v24 }
 0x20a   :  { %2355 = vtanh.f32 %v2851_v28 }
 0x214   :  { %v2356_v38 = vpop.eup %2355 }
 0x215   :  { %v423_v43 = vmul.f32 %v2356_v38, %v417_v37 }
 0x217   :  { %494 = vmatmul.mubr.f32.vlgmr.msra.gmra.mrb[4].mxu0 %v423_v43  ;;  %565 = vmatmul.mubr.f32.vlgmr.msra.gmra.mrb[4].mxu1 %v423_v43 }
 0x218   :  { %1969 = vmatpush1.bf16.msra.mxu0 %v2483_v8  ;;  %2001 = vmatpush1.bf16.msra.mxu1 %v2511_v18 }
 0x219   :  { %1971 = vmatprep.subr.bf16.mxu0 %v2485_v9  ;;  %2003 = vmatprep.subr.bf16.mxu1 %v2535_v26 }
 0x21a   :  { %662 = vmatprep.mubr.f32.mxu0 %v2423_v3  ;;  %733 = vmatprep.mubr.f32.mxu1 %v2423_v3 }
 0x21c   :  { %1973 = vmatpush1.bf16.msra.mxu0 %v2507_v16  ;;  %2005 = vmatpush1.bf16.msra.mxu1 %v2547_v30 }
 0x21d   :  { %1975 = vmatprep.subr.bf16.mxu0 %v2523_v22  ;;  %2007 = vmatprep.subr.bf16.mxu1 %v2574_v39 }
 0x220   :  { %1977 = vmatpush1.bf16.msra.mxu0 %v2553_v32  ;;  %2009 = vmatpush1.bf16.msra.mxu1 %v2589_v44 }
 0x221   :  { %1979 = vmatprep.subr.bf16.mxu0 %v2566_v36  ;;  %2011 = vmatprep.subr.bf16.mxu1 %v2601_v48 }
 0x224   :  { %1981 = vmatpush1.bf16.msra.mxu0 %v2595_v46  ;;  %2013 = vmatpush1.bf16.msra.mxu1 %v2628_v57 }
 0x225   :  { %1983 = vmatprep.subr.bf16.mxu0 %v2610_v51  ;;  %2015 = vmatprep.subr.bf16.mxu1 %v2637_v60 }
 0x228   :  { %1985 = vmatpush1.bf16.msra.mxu0 %v2631_v58  ;;  %2017 = vmatpush1.bf16.msra.mxu1 %v2664_v7 }
 0x229   :  { %1987 = vmatprep.subr.bf16.mxu0 %v2646_v63  ;;  %2019 = vmatprep.subr.bf16.mxu1 %v2673_v12 }
 0x22c   :  { %1989 = vmatpush1.bf16.msra.mxu0 %v2667_v10  ;;  %2021 = vmatpush1.bf16.msra.mxu1 %v2700_v25 }
 0x22d   :  { %1991 = vmatprep.subr.bf16.mxu0 %v2682_v15  ;;  %2023 = vmatprep.subr.bf16.mxu1 %v2709_v29 }
 0x230   :  { %1993 = vmatpush1.bf16.msra.mxu0 %v2703_v27  ;;  %2025 = vmatpush1.bf16.msra.mxu1 %v2730_v40 }
 0x231   :  { %1995 = vmatprep.subr.bf16.mxu0 %v2718_v34  ;;  %2027 = vmatprep.subr.bf16.mxu1 %v2736_v42 }
 0x234   :  { %1997 = vmatpush1.bf16.msra.mxu0 %v2733_v41  ;;  %2029 = vmatpush1.bf16.msra.mxu1 %v2746_v47 }
 0x235   :  { %2031 = vmatprep.subr.bf16.mxu0 %v2472_v4  ;;  %2063 = vmatprep.subr.bf16.mxu1 %v2509_v17 }
 0x2ea   :  { %v495_v49 = vpop.f32.mrb[4].mxu0  ;;  %v566_v50 = vpop.f32.mrb[4].mxu1 }
 0x2eb   :  { %v571_v52 = vadd.f32 %v1644_v31, %v495_v49  ;;  %v497_v53 = vpop.f32.mrb[5].mxu0  ;;  %v568_v54 = vpop.f32.mrb[5].mxu1  ;;  %v573_v1 = vadd.f32 %v1646_v0, %v566_v50  ;;  %v1649_v31 = vld [vmem:[%s3239_s0 + $0x68] sm:$0xff] }
 0x2ec   :  { %v572_v55 = vadd.f32 %v1645_v45, %v497_v53  ;;  %v574_v62 = vadd.f32 %v1647_v56, %v568_v54 }
 0x2ed   :  { %v575_v59 = vmul.f32 0.5, %v571_v52  ;;  %v577_v2 = vmul.f32 0.5, %v573_v1 }
 0x2ee   :  { %v576_v61 = vmul.f32 0.5, %v572_v55  ;;  %v1651_v55 = vld [vmem:[%s3239_s0 + $0x78] sm:$0xff] }
 0x2ef   :  { %2357 = vtanh.f32 %v575_v59 }
 0x2f0   :  { %2359 = vtanh.f32 %v576_v61 }
 0x2f1   :  { %2361 = vtanh.f32 %v574_v62  ;;  %v1650_v62 = vld [vmem:[%s3239_s0 + $0x70] sm:$0xff] }
 0x2f2   :  { %2363 = vtanh.f32 %v577_v2 }
 0x2f9   :  { %v2358_v5 = vpop.eup %2357 }
 0x2fa   :  { %v581_v6 = vadd.f32 1.0, %v2358_v5  ;;  %v2360_v11 = vpop.eup %2359 }
 0x2fb   :  { %v582_v14 = vadd.f32 1.0, %v2360_v11  ;;  %v2362_v19 = vpop.eup %2361 }
 0x2fc   :  { %v584_v13 = vmul.f32 0.5, %v581_v6  ;;  %v2364_v33 = vpop.eup %2363 }
 0x2fd   :  { %v585_v20 = vmul.f32 0.5, %v582_v14  ;;  %v583_v35 = vadd.f32 1.0, %v2364_v33 }
 0x2fe   :  { %v589_v21 = vmul.f32 %v2362_v19, %v584_v13 }
 0x2ff   :  { %v588_v23 = vmul.f32 %v585_v20, %v2851_v28  ;;  %v586_v37 = vmul.f32 0.5, %v583_v35  ;;  %v1648_v28 = vld [vmem:[%s3239_s0 + $0x60] sm:$0xff] }
 0x301   :  { %v2901_v24 = vadd.f32 %v589_v21, %v588_v23 }
 0x303   :  { %2365 = vtanh.f32 %v2901_v24 }
 0x30d   :  { %v2366_v38 = vpop.eup %2365 }
 0x30e   :  { %v592_v43 = vmul.f32 %v2366_v38, %v586_v37 }
 0x310   :  { %663 = vmatmul.mubr.f32.vlgmr.msra.gmra.mrb[6].mxu0 %v592_v43  ;;  %734 = vmatmul.mubr.f32.vlgmr.msra.gmra.mrb[6].mxu1 %v592_v43 }
 0x311   :  { %2033 = vmatpush1.bf16.msra.mxu0 %v2483_v8  ;;  %2065 = vmatpush1.bf16.msra.mxu1 %v2511_v18 }
 0x312   :  { %2035 = vmatprep.subr.bf16.mxu0 %v2485_v9  ;;  %2067 = vmatprep.subr.bf16.mxu1 %v2535_v26 }
 0x313   :  { %831 = vmatprep.mubr.f32.mxu0 %v2423_v3  ;;  %902 = vmatprep.mubr.f32.mxu1 %v2423_v3 }
 0x315   :  { %2037 = vmatpush1.bf16.msra.mxu0 %v2507_v16  ;;  %2069 = vmatpush1.bf16.msra.mxu1 %v2547_v30 }
 0x316   :  { %2039 = vmatprep.subr.bf16.mxu0 %v2523_v22  ;;  %2071 = vmatprep.subr.bf16.mxu1 %v2574_v39 }
 0x319   :  { %2041 = vmatpush1.bf16.msra.mxu0 %v2553_v32  ;;  %2073 = vmatpush1.bf16.msra.mxu1 %v2589_v44 }
 0x31a   :  { %2043 = vmatprep.subr.bf16.mxu0 %v2566_v36  ;;  %2075 = vmatprep.subr.bf16.mxu1 %v2601_v48 }
 0x31d   :  { %2045 = vmatpush1.bf16.msra.mxu0 %v2595_v46  ;;  %2077 = vmatpush1.bf16.msra.mxu1 %v2628_v57 }
 0x31e   :  { %2047 = vmatprep.subr.bf16.mxu0 %v2610_v51  ;;  %2079 = vmatprep.subr.bf16.mxu1 %v2637_v60 }
 0x321   :  { %2049 = vmatpush1.bf16.msra.mxu0 %v2631_v58  ;;  %2081 = vmatpush1.bf16.msra.mxu1 %v2664_v7 }
 0x322   :  { %2051 = vmatprep.subr.bf16.mxu0 %v2646_v63  ;;  %2083 = vmatprep.subr.bf16.mxu1 %v2673_v12 }
 0x325   :  { %2053 = vmatpush1.bf16.msra.mxu0 %v2667_v10  ;;  %2085 = vmatpush1.bf16.msra.mxu1 %v2700_v25 }
 0x326   :  { %2055 = vmatprep.subr.bf16.mxu0 %v2682_v15  ;;  %2087 = vmatprep.subr.bf16.mxu1 %v2709_v29 }
 0x329   :  { %2057 = vmatpush1.bf16.msra.mxu0 %v2703_v27  ;;  %2089 = vmatpush1.bf16.msra.mxu1 %v2730_v40 }
 0x32a   :  { %2059 = vmatprep.subr.bf16.mxu0 %v2718_v34  ;;  %2091 = vmatprep.subr.bf16.mxu1 %v2736_v42 }
 0x32d   :  { %2061 = vmatpush1.bf16.msra.mxu0 %v2733_v41  ;;  %2093 = vmatpush1.bf16.msra.mxu1 %v2746_v47 }
 0x32e   :  { %2095 = vmatprep.subr.bf16.mxu0 %v2472_v4  ;;  %2127 = vmatprep.subr.bf16.mxu1 %v2509_v17 }
 0x3e3   :  { %v664_v45 = vpop.f32.mrb[6].mxu0  ;;  %v735_v49 = vpop.f32.mrb[6].mxu1 }
 0x3e4   :  { %v740_v50 = vadd.f32 %v1648_v28, %v664_v45  ;;  %v666_v52 = vpop.f32.mrb[7].mxu0  ;;  %v737_v53 = vpop.f32.mrb[7].mxu1  ;;  %v742_v0 = vadd.f32 %v1650_v62, %v735_v49  ;;  %v1653_v28 = vld [vmem:[%s3239_s0 + $0x88] sm:$0xff] }
 0x3e5   :  { %v741_v54 = vadd.f32 %v1649_v31, %v666_v52  ;;  %v743_v61 = vadd.f32 %v1651_v55, %v737_v53 }
 0x3e6   :  { %v744_v56 = vmul.f32 0.5, %v740_v50  ;;  %v746_v1 = vmul.f32 0.5, %v742_v0 }
 0x3e7   :  { %v745_v59 = vmul.f32 0.5, %v741_v54  ;;  %v1655_v54 = vld [vmem:[%s3239_s0 + $0x98] sm:$0xff] }
 0x3e8   :  { %2367 = vtanh.f32 %v744_v56 }
 0x3e9   :  { %2369 = vtanh.f32 %v745_v59 }
 0x3ea   :  { %2371 = vtanh.f32 %v743_v61  ;;  %v1654_v61 = vld [vmem:[%s3239_s0 + $0x90] sm:$0xff] }
 0x3eb   :  { %2373 = vtanh.f32 %v746_v1 }
 0x3f2   :  { %v2368_v2 = vpop.eup %2367 }
 0x3f3   :  { %v750_v5 = vadd.f32 1.0, %v2368_v2  ;;  %v2370_v6 = vpop.eup %2369 }
 0x3f4   :  { %v751_v13 = vadd.f32 1.0, %v2370_v6  ;;  %v2372_v14 = vpop.eup %2371 }
 0x3f5   :  { %v753_v11 = vmul.f32 0.5, %v750_v5  ;;  %v2374_v33 = vpop.eup %2373 }
 0x3f6   :  { %v754_v19 = vmul.f32 0.5, %v751_v13  ;;  %v752_v35 = vadd.f32 1.0, %v2374_v33 }
 0x3f7   :  { %v758_v20 = vmul.f32 %v2372_v14, %v753_v11 }
 0x3f8   :  { %v757_v21 = vmul.f32 %v754_v19, %v2901_v24  ;;  %v755_v37 = vmul.f32 0.5, %v752_v35  ;;  %v1652_v24 = vld [vmem:[%s3239_s0 + $0x80] sm:$0xff] }
 0x3fa   :  { %v2951_v23 = vadd.f32 %v758_v20, %v757_v21 }
 0x3fc   :  { %2375 = vtanh.f32 %v2951_v23 }
 0x406   :  { %v2376_v38 = vpop.eup %2375 }
 0x407   :  { %v761_v43 = vmul.f32 %v2376_v38, %v755_v37 }
 0x409   :  { %832 = vmatmul.mubr.f32.vlgmr.msra.gmra.mrb[8].mxu0 %v761_v43  ;;  %903 = vmatmul.mubr.f32.vlgmr.msra.gmra.mrb[8].mxu1 %v761_v43 }
 0x40a   :  { %2097 = vmatpush1.bf16.msra.mxu0 %v2483_v8  ;;  %2129 = vmatpush1.bf16.msra.mxu1 %v2511_v18 }
 0x40b   :  { %2099 = vmatprep.subr.bf16.mxu0 %v2485_v9  ;;  %2131 = vmatprep.subr.bf16.mxu1 %v2535_v26 }
 0x40c   :  { %1000 = vmatprep.mubr.f32.mxu0 %v2423_v3  ;;  %1071 = vmatprep.mubr.f32.mxu1 %v2423_v3 }
 0x40e   :  { %2101 = vmatpush1.bf16.msra.mxu0 %v2507_v16  ;;  %2133 = vmatpush1.bf16.msra.mxu1 %v2547_v30 }
 0x40f   :  { %2103 = vmatprep.subr.bf16.mxu0 %v2523_v22  ;;  %2135 = vmatprep.subr.bf16.mxu1 %v2574_v39 }
 0x412   :  { %2105 = vmatpush1.bf16.msra.mxu0 %v2553_v32  ;;  %2137 = vmatpush1.bf16.msra.mxu1 %v2589_v44 }
 0x413   :  { %2107 = vmatprep.subr.bf16.mxu0 %v2566_v36  ;;  %2139 = vmatprep.subr.bf16.mxu1 %v2601_v48 }
 0x416   :  { %2109 = vmatpush1.bf16.msra.mxu0 %v2595_v46  ;;  %2141 = vmatpush1.bf16.msra.mxu1 %v2628_v57 }
 0x417   :  { %2111 = vmatprep.subr.bf16.mxu0 %v2610_v51  ;;  %2143 = vmatprep.subr.bf16.mxu1 %v2637_v60 }
 0x41a   :  { %2113 = vmatpush1.bf16.msra.mxu0 %v2631_v58  ;;  %2145 = vmatpush1.bf16.msra.mxu1 %v2664_v7 }
 0x41b   :  { %2115 = vmatprep.subr.bf16.mxu0 %v2646_v63  ;;  %2147 = vmatprep.subr.bf16.mxu1 %v2673_v12 }
 0x41e   :  { %2117 = vmatpush1.bf16.msra.mxu0 %v2667_v10  ;;  %2149 = vmatpush1.bf16.msra.mxu1 %v2700_v25 }
 0x41f   :  { %2119 = vmatprep.subr.bf16.mxu0 %v2682_v15  ;;  %2151 = vmatprep.subr.bf16.mxu1 %v2709_v29 }
 0x422   :  { %2121 = vmatpush1.bf16.msra.mxu0 %v2703_v27  ;;  %2153 = vmatpush1.bf16.msra.mxu1 %v2730_v40 }
 0x423   :  { %2123 = vmatprep.subr.bf16.mxu0 %v2718_v34  ;;  %2155 = vmatprep.subr.bf16.mxu1 %v2736_v42 }
 0x426   :  { %2125 = vmatpush1.bf16.msra.mxu0 %v2733_v41  ;;  %2157 = vmatpush1.bf16.msra.mxu1 %v2746_v47 }
 0x427   :  { %2159 = vmatprep.subr.bf16.mxu0 %v2472_v4  ;;  %2191 = vmatprep.subr.bf16.mxu1 %v2509_v17 }
 0x4dc   :  { %v833_v31 = vpop.f32.mrb[8].mxu0  ;;  %v904_v45 = vpop.f32.mrb[8].mxu1 }
 0x4dd   :  { %v909_v49 = vadd.f32 %v1652_v24, %v833_v31  ;;  %v835_v50 = vpop.f32.mrb[9].mxu0  ;;  %v906_v52 = vpop.f32.mrb[9].mxu1  ;;  %v911_v62 = vadd.f32 %v1654_v61, %v904_v45  ;;  %v1657_v24 = vld [vmem:[%s3239_s0 + $0xa8] sm:$0xff] }
 0x4de   :  { %v910_v53 = vadd.f32 %v1653_v28, %v835_v50  ;;  %v912_v59 = vadd.f32 %v1655_v54, %v906_v52 }
 0x4df   :  { %v913_v55 = vmul.f32 0.5, %v909_v49  ;;  %v915_v0 = vmul.f32 0.5, %v911_v62 }
 0x4e0   :  { %v914_v56 = vmul.f32 0.5, %v910_v53 }
 0x4e1   :  { %2377 = vtanh.f32 %v913_v55  ;;  %v1658_v55 = vld [vmem:[%s3239_s0 + $0xb0] sm:$0xff] }
 0x4e2   :  { %2379 = vtanh.f32 %v914_v56 }
 0x4e3   :  { %2381 = vtanh.f32 %v912_v59 }
 0x4e4   :  { %2383 = vtanh.f32 %v915_v0 }
 0x4eb   :  { %v2378_v1 = vpop.eup %2377 }
 0x4ec   :  { %v919_v2 = vadd.f32 1.0, %v2378_v1  ;;  %v2380_v5 = vpop.eup %2379 }
 0x4ed   :  { %v920_v11 = vadd.f32 1.0, %v2380_v5  ;;  %v2382_v13 = vpop.eup %2381 }
 0x4ee   :  { %v922_v6 = vmul.f32 0.5, %v919_v2  ;;  %v2384_v33 = vpop.eup %2383 }
 0x4ef   :  { %v923_v14 = vmul.f32 0.5, %v920_v11  ;;  %v921_v35 = vadd.f32 1.0, %v2384_v33 }
 0x4f0   :  { %v927_v19 = vmul.f32 %v2382_v13, %v922_v6 }
 0x4f1   :  { %v926_v20 = vmul.f32 %v923_v14, %v2951_v23  ;;  %v924_v37 = vmul.f32 0.5, %v921_v35  ;;  %v1656_v23 = vld [vmem:[%s3239_s0 + $0xa0] sm:$0xff] }
 0x4f3   :  { %v3001_v21 = vadd.f32 %v927_v19, %v926_v20 }
 0x4f5   :  { %2385 = vtanh.f32 %v3001_v21 }
 0x4ff   :  { %v2386_v38 = vpop.eup %2385 }
 0x500   :  { %v930_v43 = vmul.f32 %v2386_v38, %v924_v37  ;;  %v1439_v38 = vld [vmem:[%s3240_s2 + $0x8] sm:$0xff] }
 0x502   :  { %1001 = vmatmul.mubr.f32.vlgmr.msra.gmra.mrb[10].mxu0 %v930_v43  ;;  %1072 = vmatmul.mubr.f32.vlgmr.msra.gmra.mrb[10].mxu1 %v930_v43 }
 0x503   :  { %2161 = vmatpush1.bf16.msra.mxu0 %v2483_v8  ;;  %2193 = vmatpush1.bf16.msra.mxu1 %v2511_v18 }
 0x504   :  { %2163 = vmatprep.subr.bf16.mxu0 %v2485_v9  ;;  %2195 = vmatprep.subr.bf16.mxu1 %v2535_v26 }
 0x505   :  { %1169 = vmatprep.mubr.f32.mxu0 %v2423_v3  ;;  %1240 = vmatprep.mubr.f32.mxu1 %v2423_v3 }
 0x507   :  { %2165 = vmatpush1.bf16.msra.mxu0 %v2507_v16  ;;  %2197 = vmatpush1.bf16.msra.mxu1 %v2547_v30 }
 0x508   :  { %2167 = vmatprep.subr.bf16.mxu0 %v2523_v22  ;;  %2199 = vmatprep.subr.bf16.mxu1 %v2574_v39 }
 0x50b   :  { %2169 = vmatpush1.bf16.msra.mxu0 %v2553_v32  ;;  %2201 = vmatpush1.bf16.msra.mxu1 %v2589_v44 }
 0x50c   :  { %2171 = vmatprep.subr.bf16.mxu0 %v2566_v36  ;;  %2203 = vmatprep.subr.bf16.mxu1 %v2601_v48 }
 0x50f   :  { %2173 = vmatpush1.bf16.msra.mxu0 %v2595_v46  ;;  %2205 = vmatpush1.bf16.msra.mxu1 %v2628_v57 }
 0x510   :  { %2175 = vmatprep.subr.bf16.mxu0 %v2610_v51  ;;  %2207 = vmatprep.subr.bf16.mxu1 %v2637_v60 }
 0x513   :  { %2177 = vmatpush1.bf16.msra.mxu0 %v2631_v58  ;;  %2209 = vmatpush1.bf16.msra.mxu1 %v2664_v7 }
 0x514   :  { %2179 = vmatprep.subr.bf16.mxu0 %v2646_v63  ;;  %2211 = vmatprep.subr.bf16.mxu1 %v2673_v12 }
 0x517   :  { %2181 = vmatpush1.bf16.msra.mxu0 %v2667_v10  ;;  %2213 = vmatpush1.bf16.msra.mxu1 %v2700_v25 }
 0x518   :  { %2183 = vmatprep.subr.bf16.mxu0 %v2682_v15  ;;  %2215 = vmatprep.subr.bf16.mxu1 %v2709_v29 }
 0x51b   :  { %2185 = vmatpush1.bf16.msra.mxu0 %v2703_v27  ;;  %2217 = vmatpush1.bf16.msra.mxu1 %v2730_v40 }
 0x51c   :  { %2187 = vmatprep.subr.bf16.mxu0 %v2718_v34  ;;  %2219 = vmatprep.subr.bf16.mxu1 %v2736_v42 }
 0x51f   :  { %2189 = vmatpush1.bf16.msra.mxu0 %v2733_v41  ;;  %2221 = vmatpush1.bf16.msra.mxu1 %v2746_v47 }
 0x520   :  { %2223 = vmatprep.subr.bf16.mxu0 %v2472_v4  ;;  %2255 = vmatprep.subr.bf16.mxu1 %v2509_v17  ;;  %v1659_v4 = vld [vmem:[%s3239_s0 + $0xb8] sm:$0xff] }
 0x5d5   :  { %v1002_v28 = vpop.f32.mrb[10].mxu0  ;;  %v1073_v31 = vpop.f32.mrb[10].mxu1 }
 0x5d6   :  { %v1078_v45 = vadd.f32 %v1656_v23, %v1002_v28  ;;  %v1004_v49 = vpop.f32.mrb[11].mxu0  ;;  %v1075_v50 = vpop.f32.mrb[11].mxu1  ;;  %v1080_v56 = vadd.f32 %v1658_v55, %v1073_v31  ;;  %v2424_v23 = vmov 0.0|0.0   ;;  %v1441_v28 = vld [vmem:[%s3240_s2 + $0x18] sm:$0xff] }
 0x5d7   :  { %v1079_v52 = vadd.f32 %v1657_v24, %v1004_v49  ;;  %v1081_v54 = vadd.f32 %v1659_v4, %v1075_v50  ;;  %v1440_v24 = vld [vmem:[%s3240_s2 + $0x10] sm:$0xff]  ;;  %v1443_v49 = vld [vmem:[%s3240_s2 + $0x28] sm:$0xff]  ;;  %v1445_v4 = vld [vmem:[%s3240_s2 + $0x38] sm:$0xff] }
 0x5d8   :  { %v1082_v53 = vmul.f32 0.5, %v1078_v45  ;;  %v1084_v59 = vmul.f32 0.5, %v1080_v56  ;;  %v2290_v31 = vpack.c.bf16 %v1441_v28, %v1440_v24  ;;  %v1442_v45 = vld [vmem:[%s3240_s2 + $0x20] sm:$0xff]  ;;  %v1448_v56 = vld [vmem:[%s3240_s2 + $0x50] sm:$0xff] }
 0x5d9   :  { %v1083_v17 = vmul.f32 0.5, %v1079_v52  ;;  %v2293_v50 = vpack.c.bf16 %v1443_v49, %v1442_v45  ;;  %v1444_v52 = vld [vmem:[%s3240_s2 + $0x30] sm:$0xff] }
 0x5da   :  { %2387 = vtanh.f32 %v1082_v53  ;;  %v2296_v53 = vpack.c.bf16 %v1445_v4, %v1444_v52  ;;  %v1542_v49 = vld [vmem:[%s3241_s4 + $0x50] sm:$0xff]  ;;  %v1545_v4 = vld [vmem:[%s3241_s4 + $0x68] sm:$0xff] }
 0x5db   :  { %2389 = vtanh.f32 %v1083_v17  ;;  %v1446_v17 = vld [vmem:[%s3240_s2 + $0x40] sm:$0xff] }
 0x5dc   :  { %2391 = vtanh.f32 %v1081_v54  ;;  %v1447_v54 = vld [vmem:[%s3240_s2 + $0x48] sm:$0xff] }
 0x5dd   :  { %2393 = vtanh.f32 %v1084_v59  ;;  %v2299_v55 = vpack.c.bf16 %v1447_v54, %v1446_v17  ;;  %v1449_v59 = vld [vmem:[%s3240_s2 + $0x58] sm:$0xff]  ;;  %v1546_v17 = vld [vmem:[%s3241_s4 + $0x70] sm:$0xff] }
 0x5de   :  { %v1547_v54 = vld [vmem:[%s3241_s4 + $0x78] sm:$0xff] }
 0x5e4   :  { %v2388_v61 = vpop.eup %2387 }
 0x5e5   :  { %v1088_v62 = vadd.f32 1.0, %v2388_v61  ;;  %v2390_v0 = vpop.eup %2389  ;;  %v2302_v61 = vpack.c.bf16 %v1449_v59, %v1448_v56  ;;  %v1668_v56 = vld [vmem:[%s3242_s3] ss:$0 sm:$0xff] }
 0x5e6   :  { %v1089_v2 = vadd.f32 1.0, %v2390_v0  ;;  %v2392_v5 = vpop.eup %2391  ;;  %v1451_v0 = vld [vmem:[%s3240_s2 + $0x68] sm:$0xff] }
 0x5e7   :  { %v1091_v1 = vmul.f32 0.5, %v1088_v62  ;;  %v2394_v19 = vpop.eup %2393  ;;  %v1450_v62 = vld [vmem:[%s3240_s2 + $0x60] sm:$0xff] }
 0x5e8   :  { %v1092_v6 = vmul.f32 0.5, %v1089_v2  ;;  %v1090_v20 = vadd.f32 1.0, %v2394_v19  ;;  %v1452_v2 = vld [vmem:[%s3240_s2 + $0x70] sm:$0xff]  ;;  %v1535_v19 = vld [vmem:[%s3241_s4 + $0x18] sm:$0xff] }
 0x5e9   :  { %v1096_v11 = vmul.f32 %v2392_v5, %v1091_v1  ;;  %v2305_v1 = vpack.c.bf16 %v1451_v0, %v1450_v62  ;;  %v1453_v5 = vld [vmem:[%s3240_s2 + $0x78] sm:$0xff] }
 0x5ea   :  { %v1095_v13 = vmul.f32 %v1092_v6, %v3001_v21  ;;  %v1093_v33 = vmul.f32 0.5, %v1090_v20  ;;  %v1438_v21 = vld [vmem:[%s3240_s2] sm:$0xff]  ;;  %v2308_v6 = vpack.c.bf16 %v1453_v5, %v1452_v2 }
 0x5eb   :  { %v2287_v43 = vpack.c.bf16 %v1439_v38, %v1438_v21 }
 0x5ec   :  { %v3051_v14 = vadd.f32 %v1096_v11, %v1095_v13  ;;  %v1533_v11 = vld [vmem:[%s3241_s4 + $0x8] sm:$0xff]  ;;  %v1534_v13 = vld [vmem:[%s3241_s4 + $0x10] sm:$0xff] }
 0x5ed   :  { %v2314_v20 = vpack.c.bf16 %v1535_v19, %v1534_v13 }
 0x5ee   :  { %2395 = vtanh.f32 %v3051_v14 }
 0x5f8   :  { %v2396_v35 = vpop.eup %2395 }
 0x5f9   :  { %v1099_v37 = vmul.f32 %v2396_v35, %v1093_v33  ;;  %v1536_v33 = vld [vmem:[%s3241_s4 + $0x20] sm:$0xff]  ;;  %v1537_v35 = vld [vmem:[%s3241_s4 + $0x28] sm:$0xff] }
 0x5fb   :  { %1170 = vmatmul.mubr.f32.vlgmr.msra.gmra.mrb[12].mxu0 %v1099_v37  ;;  %1241 = vmatmul.mubr.f32.vlgmr.msra.gmra.mrb[12].mxu1 %v1099_v37  ;;  %v2317_v37 = vpack.c.bf16 %v1537_v35, %v1536_v33 }
 0x5fc   :  { %2225 = vmatpush1.bf16.msra.mxu0 %v2483_v8  ;;  %2257 = vmatpush1.bf16.msra.mxu1 %v2511_v18  ;;  %v1660_v8 = vld [vmem:[%s3239_s0 + $0xc0] sm:$0xff] }
 0x5fd   :  { %2227 = vmatprep.subr.bf16.mxu0 %v2485_v9  ;;  %2259 = vmatprep.subr.bf16.mxu1 %v2535_v26  ;;  %v1661_v9 = vld [vmem:[%s3239_s0 + $0xc8] sm:$0xff] }
 0x5fe   :  { %1338 = vmatprep.mubr.f32.mxu0 %v2423_v3  ;;  %1409 = vmatprep.mubr.f32.mxu1 %v2423_v3 }
 0x600   :  { %2229 = vmatpush1.bf16.msra.mxu0 %v2507_v16  ;;  %2261 = vmatpush1.bf16.msra.mxu1 %v2547_v30 }
 0x601   :  { %2231 = vmatprep.subr.bf16.mxu0 %v2523_v22  ;;  %2263 = vmatprep.subr.bf16.mxu1 %v2574_v39 }
 0x604   :  { %2233 = vmatpush1.bf16.msra.mxu0 %v2553_v32  ;;  %2265 = vmatpush1.bf16.msra.mxu1 %v2589_v44 }
 0x605   :  { %2235 = vmatprep.subr.bf16.mxu0 %v2566_v36  ;;  %2267 = vmatprep.subr.bf16.mxu1 %v2601_v48  ;;  %v1663_v36 = vld [vmem:[%s3239_s0 + $0xd8] sm:$0xff]  ;;  %v1662_v48 = vld [vmem:[%s3239_s0 + $0xd0] sm:$0xff] }
 0x608   :  { %2237 = vmatpush1.bf16.msra.mxu0 %v2595_v46  ;;  %2269 = vmatpush1.bf16.msra.mxu1 %v2628_v57 }
 0x609   :  { %2239 = vmatprep.subr.bf16.mxu0 %v2610_v51  ;;  %2271 = vmatprep.subr.bf16.mxu1 %v2637_v60 }
 0x60c   :  { %2241 = vmatpush1.bf16.msra.mxu0 %v2631_v58  ;;  %2273 = vmatpush1.bf16.msra.mxu1 %v2664_v7 }
 0x60d   :  { %2243 = vmatprep.subr.bf16.mxu0 %v2646_v63  ;;  %2275 = vmatprep.subr.bf16.mxu1 %v2673_v12 }
 0x610   :  { %2245 = vmatpush1.bf16.msra.mxu0 %v2667_v10  ;;  %2277 = vmatpush1.bf16.msra.mxu1 %v2700_v25 }
 0x611   :  { %2247 = vmatprep.subr.bf16.mxu0 %v2682_v15  ;;  %2279 = vmatprep.subr.bf16.mxu1 %v2709_v29 }
 0x614   :  { %2249 = vmatpush1.bf16.msra.mxu0 %v2703_v27  ;;  %2281 = vmatpush1.bf16.msra.mxu1 %v2730_v40 }
 0x615   :  { %2251 = vmatprep.subr.bf16.mxu0 %v2718_v34  ;;  %2283 = vmatprep.subr.bf16.mxu1 %v2736_v42 }
 0x618   :  { %2253 = vmatpush1.bf16.msra.mxu0 %v2733_v41  ;;  %2285 = vmatpush1.bf16.msra.mxu1 %v2746_v47 }
 0x619   :  { %2286 = vmatprep.subr.bf16.mxu0 %v2424_v23  ;;  %2310 = vmatprep.subr.bf16.mxu1 %v2424_v23 }
 0x6ce   :  { %v1171_v16 = vpop.f32.mrb[12].mxu0  ;;  %v1242_v18 = vpop.f32.mrb[12].mxu1 }
 0x6cf   :  { %v1247_v22 = vadd.f32 %v1660_v8, %v1171_v16  ;;  %v1173_v26 = vpop.f32.mrb[13].mxu0  ;;  %v1244_v30 = vpop.f32.mrb[13].mxu1  ;;  %v1249_v51 = vadd.f32 %v1662_v48, %v1242_v18  ;;  %v1538_v8 = vld [vmem:[%s3241_s4 + $0x30] sm:$0xff]  ;;  %v1540_v18 = vld [vmem:[%s3241_s4 + $0x40] sm:$0xff] }
 0x6d0   :  { %v1248_v32 = vadd.f32 %v1661_v9, %v1173_v26  ;;  %v1250_v46 = vadd.f32 %v1663_v36, %v1244_v30  ;;  %v1539_v9 = vld [vmem:[%s3241_s4 + $0x38] sm:$0xff]  ;;  %v1664_v30 = vld [vmem:[%s3239_s0 + $0xe0] sm:$0xff] }
 0x6d1   :  { %v1251_v39 = vmul.f32 0.5, %v1247_v22  ;;  %v1253_v57 = vmul.f32 0.5, %v1249_v51  ;;  %v2320_v16 = vpack.c.bf16 %v1539_v9, %v1538_v8  ;;  %v1541_v22 = vld [vmem:[%s3241_s4 + $0x48] sm:$0xff] }
 0x6d2   :  { %v1252_v44 = vmul.f32 0.5, %v1248_v32  ;;  %v2323_v26 = vpack.c.bf16 %v1541_v22, %v1540_v18  ;;  %v1665_v32 = vld [vmem:[%s3239_s0 + $0xe8] sm:$0xff] }
 0x6d3   :  { %2397 = vtanh.f32 %v1251_v39 }
 0x6d4   :  { %2399 = vtanh.f32 %v1252_v44 }
 0x6d5   :  { %2401 = vtanh.f32 %v1250_v46 }
 0x6d6   :  { %2403 = vtanh.f32 %v1253_v57  ;;  %v1667_v57 = vld [vmem:[%s3239_s0 + $0xf8] sm:$0xff] }
 0x6dd   :  { %v2398_v58 = vpop.eup %2397 }
 0x6de   :  { %v1257_v60 = vadd.f32 1.0, %v2398_v58  ;;  %v2400_v63 = vpop.eup %2399 }
 0x6df   :  { %v1258_v10 = vadd.f32 1.0, %v2400_v63  ;;  %v2402_v12 = vpop.eup %2401 }
 0x6e0   :  { %v1260_v7 = vmul.f32 0.5, %v1257_v60  ;;  %v2404_v34 = vpop.eup %2403 }
 0x6e1   :  { %v1261_v15 = vmul.f32 0.5, %v1258_v10  ;;  %v1259_v40 = vadd.f32 1.0, %v2404_v34 }
 0x6e2   :  { %v1265_v25 = vmul.f32 %v2402_v12, %v1260_v7  ;;  %v1666_v7 = vld [vmem:[%s3239_s0 + $0xf0] sm:$0xff] }
 0x6e3   :  { %v1264_v27 = vmul.f32 %v1261_v15, %v3051_v14  ;;  %v1262_v41 = vmul.f32 0.5, %v1259_v40 }
 0x6e5   :  { %v3099_v29 = vadd.f32 %v1265_v25, %v1264_v27 }
 0x6e7   :  { %2405 = vtanh.f32 %v3099_v29 }
 0x6f1   :  { %v2406_v42 = vpop.eup %2405 }
 0x6f2   :  { %v1268_v47 = vmul.f32 %v2406_v42, %v1262_v41 }
 0x6f4   :  { %1339 = vmatmul.mubr.f32.vlgmr.msra.gmra.mrb[14].mxu0 %v1268_v47  ;;  %1410 = vmatmul.mubr.f32.vlgmr.msra.gmra.mrb[14].mxu1 %v1268_v47 }
 0x6f5   :  { %2288 = vmatpush3.bf16.msra.mxu0 %v2287_v43  ;;  %1736 = vmatprep.mubr.msk.f32.mxu0 %vm2425_vm0, %v2423_v3 }
 0x6f6   :  { %2289 = vmatprep.subr.bf16.mxu0 %v2424_v23  ;;  %1771 = vmatprep.mubr.msk.f32.mxu1 %vm2425_vm0, %v2423_v3  ;;  %v1532_v3 = vld [vmem:[%s3241_s4] sm:$0xff] }
 0x6f7   :  { %v2311_v14 = vpack.c.bf16 %v1533_v11, %v1532_v3 }
 0x6f9   :  { %2291 = vmatpush3.bf16.msra.mxu0 %v2290_v31  ;;  %2312 = vmatpush3.bf16.msra.mxu1 %v2311_v14 }
 0x6fa   :  { %2292 = vmatprep.subr.bf16.mxu0 %v2424_v23  ;;  %2313 = vmatprep.subr.bf16.mxu1 %v2424_v23 }
 0x6fd   :  { %2294 = vmatpush3.bf16.msra.mxu0 %v2293_v50  ;;  %2315 = vmatpush3.bf16.msra.mxu1 %v2314_v20  ;;  %v1543_v50 = vld [vmem:[%s3241_s4 + $0x58] sm:$0xff] }
 0x6fe   :  { %2295 = vmatprep.subr.bf16.mxu0 %v2424_v23  ;;  %2316 = vmatprep.subr.bf16.mxu1 %v2424_v23  ;;  %v2326_v52 = vpack.c.bf16 %v1543_v50, %v1542_v49 }
 0x701   :  { %2297 = vmatpush3.bf16.msra.mxu0 %v2296_v53  ;;  %2318 = vmatpush3.bf16.msra.mxu1 %v2317_v37 }
 0x702   :  { %2298 = vmatprep.subr.bf16.mxu0 %v2424_v23  ;;  %2319 = vmatprep.subr.bf16.mxu1 %v2424_v23 }
 0x705   :  { %2300 = vmatpush3.bf16.msra.mxu0 %v2299_v55  ;;  %2321 = vmatpush3.bf16.msra.mxu1 %v2320_v16  ;;  %v2332_v55 = vpack.c.bf16 %v1547_v54, %v1546_v17 }
 0x706   :  { %2301 = vmatprep.subr.bf16.mxu0 %v2424_v23  ;;  %2322 = vmatprep.subr.bf16.mxu1 %v2424_v23 }
 0x709   :  { %2303 = vmatpush3.bf16.msra.mxu0 %v2302_v61  ;;  %2324 = vmatpush3.bf16.msra.mxu1 %v2323_v26 }
 0x70a   :  { %2304 = vmatprep.subr.bf16.mxu0 %v2424_v23  ;;  %2325 = vmatprep.subr.bf16.mxu1 %v2424_v23 }
 0x70d   :  { %2306 = vmatpush3.bf16.msra.mxu0 %v2305_v1  ;;  %2327 = vmatpush3.bf16.msra.mxu1 %v2326_v52  ;;  %v1669_v1 = vld [vmem:[%s3243_s5] ss:$0 sm:$0xff] }
 0x70e   :  { %2307 = vmatprep.subr.bf16.mxu0 %v2424_v23  ;;  %2328 = vmatprep.subr.bf16.mxu1 %v2424_v23 }
 0x711   :  { %2309 = vmatpush3.bf16.msra.mxu0 %v2308_v6 }
 0x7c7   :  { %v1340_v36 = vpop.f32.mrb[14].mxu0  ;;  %v1411_v39 = vpop.f32.mrb[14].mxu1 }
 0x7c8   :  { %v1416_v44 = vadd.f32 %v1664_v30, %v1340_v36  ;;  %v1342_v46 = vpop.f32.mrb[15].mxu0  ;;  %v1413_v48 = vpop.f32.mrb[15].mxu1  ;;  %v1418_v10 = vadd.f32 %v1666_v7, %v1411_v39 }
 0x7c9   :  { %v1417_v51 = vadd.f32 %v1665_v32, %v1342_v46  ;;  %v1419_v63 = vadd.f32 %v1667_v57, %v1413_v48 }
 0x7ca   :  { %v1420_v58 = vmul.f32 0.5, %v1416_v44  ;;  %v1422_v12 = vmul.f32 0.5, %v1418_v10 }
 0x7cb   :  { %v1421_v60 = vmul.f32 0.5, %v1417_v51 }
 0x7cc   :  { %2407 = vtanh.f32 %v1420_v58 }
 0x7cd   :  { %2409 = vtanh.f32 %v1421_v60 }
 0x7ce   :  { %2411 = vtanh.f32 %v1419_v63 }
 0x7cf   :  { %2413 = vtanh.f32 %v1422_v12 }
 0x7d6   :  { %v2408_v15 = vpop.eup %2407 }
 0x7d7   :  { %v1426_v25 = vadd.f32 1.0, %v2408_v15  ;;  %v2410_v27 = vpop.eup %2409 }
 0x7d8   :  { %v1427_v40 = vadd.f32 1.0, %v2410_v27  ;;  %v2412_v41 = vpop.eup %2411 }
 0x7d9   :  { %v1429_v34 = vmul.f32 0.5, %v1426_v25  ;;  %v2414_v43 = vpop.eup %2413 }
 0x7da   :  { %v1430_v42 = vmul.f32 0.5, %v1427_v40  ;;  %v1428_v24 = vadd.f32 1.0, %v2414_v43 }
 0x7db   :  { %v1434_v47 = vmul.f32 %v2412_v41, %v1429_v34 }
 0x7dc   :  { %v1433_v21 = vmul.f32 %v1430_v42, %v3099_v29  ;;  %v1431_v28 = vmul.f32 0.5, %v1428_v24  ;;  %v1544_v29 = vld [vmem:[%s3241_s4 + $0x60] sm:$0xff] }
 0x7dd   :  { %v2329_v53 = vpack.c.bf16 %v1545_v4, %v1544_v29 }
 0x7de   :  { %v1435_v38 = vadd.f32 %v1434_v47, %v1433_v21 }
 0x7df   :  { %2330 = vmatpush3.bf16.msra.mxu1 %v2329_v53 }
 0x7e0   :  { %2415 = vtanh.f32 %v1435_v38  ;;  %2331 = vmatprep.subr.bf16.mxu1 %v2424_v23 }
 0x7e3   :  { %2333 = vmatpush3.bf16.msra.mxu1 %v2332_v55 }
 0x7ea   :  { %v2416_v31 = vpop.eup %2415 }
 0x7eb   :  { %v1437_v45 = vmul.f32 %v2416_v31, %v1431_v28 }
 0x7ed   :  { %1737 = vmatmul.mubr.f32.vlgmr.msra.gmra.mrb[16].mxu0 %v1437_v45 }
 0x8c0   :  { %v1527_v59 = vpop.f32.mrb[16].mxu0 }
 0x8c1   :  { %v1528_v61 = vadd.f32 %v1668_v56, %v1527_v59  ;;  %v1738_v62 = vpop.f32.mrb[17].mxu0 }
 0x8c3   :  { %2417 = vtanh.f32 %v1528_v61 }
 0x8cd   :  { %v2418_v0 = vpop.eup %2417 }
 0x8ce   :  { %1772 = vmatmul.mubr.f32.vlgmr.msra.gmra.mrb[16].mxu1 %v2418_v0 }
 0x9a1   :  { %v1621_v2 = vpop.f32.mrb[16].mxu1 }
 0x9a2   :  { %v1622_v5 = vadd.f32 %v1669_v1, %v1621_v2  ;;  %v1773_v6 = vpop.f32.mrb[17].mxu1 }
 0x9a4   :  { %1625 = vmax.xlane.f32.xlu0 %v1622_v5 }
 0xa31   :  { %v1626_v23 = vpop.xlane.xlu0 %1625 }
 0xa32   :  { %v1627_v3 = vsub.f32 %v1622_v5, %v1626_v23 }
 0xa34   :  { %v1628_v11 = vmul.f32 1.442695, %v1627_v3 }
 0xa36   :  { %2419 = vpow2.f32 %v1628_v11 }
 0xa40   :  { %v2420_v13 = vpop.eup %2419 }
 0xa41   :  { %1630 = vadd.xlane.f32.xlu0 %v2420_v13 }
 0xace   :  { %v1631_v14 = vpop.xlane.xlu0 %1630 }
 0xacf   :  { %2421 = vlog2.f32 %v1631_v14 }
 0xad9   :  { %v2422_v19 = vpop.eup %2421 }
 0xada   :  { %v1633_v20 = vmul.f32 0.6931472, %v2422_v19 }
 0xadc   :  { %v1634_v33 = vsub.f32 %v1627_v3, %v1633_v20 }
 0xade   :  { %1635 = vst [vmem:[%s3244_s6] sm:$0xff] %v1634_v33 }

</bundles_post_ra>
